<compile_context>
chip_gen: v6e
topology: v6e:2x2x1
jax: 0.10.0
libtpu: 0.0.40
codegen_flags: <defaults>
</compile_context>

<pallas_src>
import math
import jax
import jax.numpy as jnp
from jax.experimental import pallas as pl
from jax.experimental.pallas import tpu as pltpu

# ---------------- small, TPU-friendly model config ----------------
VOCAB    = 256     # vocab_size
D_MODEL  = 128     # embedding_dim (1280 in original)
N_HEADS  = 4
D_HEAD   = D_MODEL // N_HEADS
DFF      = 256
N_LAYERS = 2
SEQ      = 16
BATCH    = 2
MAX_POS  = 64
EPS      = 1e-6


# ---------------- in-kernel helpers ----------------
def _layernorm(x, g, b):
    mu = jnp.mean(x, axis=-1, keepdims=True)
    xc = x - mu
    var = jnp.mean(xc * xc, axis=-1, keepdims=True)
    return xc * jax.lax.rsqrt(var + EPS) * g + b


# ---------------- fused Pallas kernel ----------------
def fused_ctrl_kernel(x0_ref, pos_ref, maskb_ref,
                      lns_ref, wqkv_ref, bqkv_ref, wo_ref, bo_ref,
                      w1_ref, b1_ref, w2_ref, b2_ref,
                      lnf_ref, embT_ref, embb_ref,
                      out_ref, x_scr):
    B, S, _ = maskb_ref.shape
    D = x0_ref.shape[-1]
    Dh = D // N_HEADS

    step = pl.program_id(0)
    last = pl.num_programs(0) - 1          # == number of encoder layers

    # ---- step 0: x = embed * sqrt(D) + positional encoding (kept in VMEM) ----
    @pl.when(step == 0)
    def _init():
        x_scr[...] = x0_ref[...] * jnp.float32(math.sqrt(D)) + pos_ref[...]

    # ---- steps 0 .. L-1: one encoder layer per grid step ----
    @pl.when(step < last)
    def _layer():
        x = x_scr[...]                                    # (B*S, D)
        lns = lns_ref[0]                                  # (4, D): ln1_g, ln1_b, ln2_g, ln2_b

        # pre-LN multi-head attention
        n1 = _layernorm(x, lns[0:1, :], lns[1:2, :])
        qkv = jnp.dot(n1, wqkv_ref[0],
                      preferred_element_type=jnp.float32) + bqkv_ref[0]   # (B*S, 3D)
        inv_sqrt_dk = jnp.float32(1.0 / math.sqrt(Dh))
        q = (qkv[:, :D] * inv_sqrt_dk).reshape(B, S, D)
        k = qkv[:, D:2 * D].reshape(B, S, D)
        v = qkv[:, 2 * D:].reshape(B, S, D)
        maskb = maskb_ref[...]                            # (B, S, S) additive -1e4 causal bias

        head_outs = []
        for h in range(N_HEADS):                          # static unrolled head loop
            sl = slice(h * Dh, (h + 1) * Dh)
            s = jnp.einsum('bqd,bkd->bqk', q[:, :, sl], k[:, :, sl],
                           preferred_element_type=jnp.float32) + maskb
            m = jnp.max(s, axis=-1, keepdims=True)
            p = jnp.exp(s - m)
            p = p * pl.reciprocal(jnp.sum(p, axis=-1, keepdims=True), approx=True)
            head_outs.append(jnp.einsum('bqk,bkd->bqd', p, v[:, :, sl],
                                        preferred_element_type=jnp.float32))
        attn = jnp.concatenate(head_outs, axis=-1).reshape(B * S, D)
        x = x + jnp.dot(attn, wo_ref[0],
                        preferred_element_type=jnp.float32) + bo_ref[0]

        # pre-LN feed-forward
        n2 = _layernorm(x, lns[2:3, :], lns[3:4, :])
        h1 = jnp.maximum(
            jnp.dot(n2, w1_ref[0], preferred_element_type=jnp.float32) + b1_ref[0], 0.0)
        x = x + jnp.dot(h1, w2_ref[0],
                        preferred_element_type=jnp.float32) + b2_ref[0]
        x_scr[...] = x

    # ---- last step: final LayerNorm + tied-embedding projection ----
    @pl.when(step == last)
    def _final():
        lnf = lnf_ref[...]                                # (2, D): gamma, beta
        xn = _layernorm(x_scr[...], lnf[0:1, :], lnf[1:2, :])
        out_ref[...] = jnp.dot(xn, embT_ref[...],
                               preferred_element_type=jnp.float32) + embb_ref[...]


# ---------------- forward (single pallas_call) ----------------
def ctrl_forward(inputs, params):
    B, S = inputs.shape
    D, V = D_MODEL, VOCAB
    layers = params["layers"]
    nl = len(layers)

    # Stack per-layer weights along a leading layer axis (indexed by the grid).
    lns  = jnp.stack([jnp.concatenate([l[0], l[1], l[10], l[11]], axis=0) for l in layers])  # (L,4,D)
    wqkv = jnp.stack([jnp.concatenate([l[2], l[4], l[6]], axis=1) for l in layers])          # (L,D,3D)
    bqkv = jnp.stack([jnp.concatenate([l[3], l[5], l[7]], axis=1) for l in layers])          # (L,1,3D)
    wo   = jnp.stack([l[8] for l in layers])                                                 # (L,D,D)
    bo   = jnp.stack([l[9] for l in layers])                                                 # (L,1,D)
    w1   = jnp.stack([l[12] for l in layers])                                                # (L,D,DFF)
    b1   = jnp.stack([l[13] for l in layers])                                                # (L,1,DFF)
    w2   = jnp.stack([l[14] for l in layers])                                                # (L,DFF,D)
    b2   = jnp.stack([l[15] for l in layers])                                                # (L,1,D)
    lnf  = jnp.concatenate([params["lng"], params["lnb"]], axis=0)                           # (2,D)

    # Embedding gather stays in plain JAX glue; rows flattened batch-major to (B*S, D).
    x0    = jnp.take(params["emb_w"], inputs, axis=0).reshape(B * S, D)
    pos   = jnp.tile(params["pos"][:S], (B, 1))                                              # (B*S, D)
    maskb = jnp.broadcast_to(params["mask"][None] * jnp.float32(-1e4), (B, S, S))            # additive

    c2 = lambda s: (0, 0)
    c3 = lambda s: (0, 0, 0)
    lmap = lambda s: (jnp.minimum(s, nl - 1), 0, 0)      # clamp on the final (projection) step

    out = pl.pallas_call(
        fused_ctrl_kernel,
        out_shape=jax.ShapeDtypeStruct((B * S, V), jnp.float32),
        grid=(nl + 1,),
        in_specs=[
            pl.BlockSpec((B * S, D), c2),                # x0 (scaled+pos on step 0)
            pl.BlockSpec((B * S, D), c2),                # positional encoding (tiled)
            pl.BlockSpec((B, S, S), c3),                 # additive causal mask bias
            pl.BlockSpec((1, 4, D), lmap),               # ln1/ln2 gamma+beta
            pl.BlockSpec((1, D, 3 * D), lmap),           # fused Wqkv
            pl.BlockSpec((1, 1, 3 * D), lmap),           # fused bqkv
            pl.BlockSpec((1, D, D), lmap),               # Wo
            pl.BlockSpec((1, 1, D), lmap),               # bo
            pl.BlockSpec((1, D, DFF), lmap),             # W1
            pl.BlockSpec((1, 1, DFF), lmap),             # b1
            pl.BlockSpec((1, DFF, D), lmap),             # W2
            pl.BlockSpec((1, 1, D), lmap),               # b2
            pl.BlockSpec((2, D), c2),                    # final LN gamma+beta
            pl.BlockSpec((D, V), c2),                    # tied embedding, transposed
            pl.BlockSpec((1, V), c2),                    # tied softmax bias
        ],
        out_specs=pl.BlockSpec((B * S, V), c2),
        scratch_shapes=[pltpu.VMEM((B * S, D), jnp.float32)],   # resident activations
        compiler_params=pltpu.CompilerParams(dimension_semantics=("arbitrary",)),
    )(x0, pos, maskb, lns, wqkv, bqkv, wo, bo, w1, b1, w2, b2, lnf,
      params["emb_wT"], params["emb_b"])
    return out.reshape(B, S, V)


# ---------------- parameter construction (deterministic) ----------------
def positional_encoding(position, d):
    # CTRL: concat(sin(even-angle cols), cos(odd-angle cols))
    pos = jnp.arange(position, dtype=jnp.float32)[:, None]
    i = jnp.arange(d, dtype=jnp.float32)[None, :]
    angle_rates = 1.0 / jnp.power(10000.0, (2.0 * jnp.floor(i / 2.0)) / d)
    angle_rads = pos * angle_rates
    sines = jnp.sin(angle_rads[:, 0::2])
    cosines = jnp.cos(angle_rads[:, 1::2])
    return jnp.concatenate([sines, cosines], axis=-1).astype(jnp.float32)


def init_params(key):
    keys = jax.random.split(key, 2 + N_LAYERS)
    params = {}
    emb_w = 0.01 * jax.random.normal(keys[0], (VOCAB, D_MODEL), jnp.float32)
    params["emb_w"]  = emb_w
    params["emb_wT"] = emb_w.T                           # (D, V) for logits matmul
    params["emb_b"]  = jnp.zeros((1, VOCAB), jnp.float32)
    params["lng"] = jnp.ones((1, D_MODEL), jnp.float32)
    params["lnb"] = jnp.zeros((1, D_MODEL), jnp.float32)
    params["pos"]  = positional_encoding(MAX_POS, D_MODEL)
    params["mask"] = jnp.triu(jnp.ones((SEQ, SEQ), jnp.float32), k=1)

    layers = []
    for l in range(N_LAYERS):
        lk = jax.random.split(keys[2 + l], 6)
        def lin(k, n_in, n_out, scale=0.05):
            return scale * jax.random.normal(k, (n_in, n_out), jnp.float32)
        layer = (
            jnp.ones((1, D_MODEL), jnp.float32),  jnp.zeros((1, D_MODEL), jnp.float32),  # ln1
            lin(lk[0], D_MODEL, D_MODEL), jnp.zeros((1, D_MODEL), jnp.float32),          # Wq,bq
            lin(lk[1], D_MODEL, D_MODEL), jnp.zeros((1, D_MODEL), jnp.float32),          # Wk,bk
            lin(lk[2], D_MODEL, D_MODEL), jnp.zeros((1, D_MODEL), jnp.float32),          # Wv,bv
            lin(lk[3], D_MODEL, D_MODEL), jnp.zeros((1, D_MODEL), jnp.float32),          # Wo,bo
            jnp.ones((1, D_MODEL), jnp.float32),  jnp.zeros((1, D_MODEL), jnp.float32),  # ln2
            lin(lk[4], D_MODEL, DFF),     jnp.zeros((1, DFF), jnp.float32),              # FFN 1
            lin(lk[5], DFF, D_MODEL),     jnp.zeros((1, D_MODEL), jnp.float32),          # FFN 2
        )
        layers.append(layer)
    params["layers"] = layers
    return params


# ---------------- pure-JAX reference for verification ----------------
def ctrl_forward_ref(inputs, params):
    def ln(x, g, b):
        mu = jnp.mean(x, -1, keepdims=True)
        var = jnp.mean((x - mu) ** 2, -1, keepdims=True)
        return (x - mu) * jax.lax.rsqrt(var + EPS) * g + b

    x = jnp.take(params["emb_w"], inputs, axis=0)
    x = x * math.sqrt(D_MODEL) + params["pos"][:inputs.shape[1]]
    mask = params["mask"]
    for (ln1g, ln1b, wq, bq, wk, bk, wv, bv, wo, bo,
         ln2g, ln2b, w1, b1, w2, b2) in params["layers"]:
        n = ln(x, ln1g, ln1b)
        q = n @ wq + bq; k = n @ wk + bk; v = n @ wv + bv
        B, S, _ = q.shape
        def heads(t):
            return t.reshape(B, S, N_HEADS, D_HEAD).transpose(0, 2, 1, 3)
        qh, kh, vh = heads(q), heads(k), heads(v)
        logits = jnp.einsum("bhqd,bhkd->bhqk", qh, kh) / math.sqrt(D_HEAD)
        logits = logits + mask * -1e4
        p = jax.nn.softmax(logits, axis=-1)
        a = jnp.einsum("bhqk,bhkd->bhqd", p, vh).transpose(0, 2, 1, 3).reshape(B, S, D_MODEL)
        x = x + (a @ wo + bo)
        n2 = ln(x, ln2g, ln2b)
        x = x + (jnp.maximum(n2 @ w1 + b1, 0.0) @ w2 + b2)
    x = ln(x, params["lng"], params["lnb"])
    return x @ params["emb_wT"] + params["emb_b"]


if __name__ == "__main__":
    key = jax.random.PRNGKey(0)
    pkey, ikey = jax.random.split(key)
    params = init_params(pkey)
    inputs = jax.random.randint(ikey, (BATCH, SEQ), 0, VOCAB, dtype=jnp.int32)

    fwd = jax.jit(ctrl_forward)
    out = jax.block_until_ready(fwd(inputs, params))
    assert out.shape == (BATCH, SEQ, VOCAB), out.shape

    ref = jax.block_until_ready(ctrl_forward_ref(inputs, params))
    assert bool(jnp.all(jnp.isfinite(out)))
    max_err = float(jnp.max(jnp.abs(out - ref)))
    # tolerance slightly relaxed vs 1e-4 because softmax uses pl.reciprocal(approx=True)
    assert bool(jnp.allclose(out, ref, rtol=2e-3, atol=2e-3)), max_err

    print("KERNEL_OK")
</pallas_src>

<mosaic_0001>
module attributes {stable_mosaic.version = 11 : i64} {
  func.func @fused_ctrl_kernel(%arg0: i32, %arg1: memref<32x128xf32, #tpu.memory_space<vmem>>, %arg2: memref<32x128xf32, #tpu.memory_space<vmem>>, %arg3: memref<2x16x16xf32, #tpu.memory_space<vmem>>, %arg4: memref<1x4x128xf32, #tpu.memory_space<vmem>>, %arg5: memref<1x128x384xf32, #tpu.memory_space<vmem>>, %arg6: memref<1x1x384xf32, #tpu.memory_space<vmem>>, %arg7: memref<1x128x128xf32, #tpu.memory_space<vmem>>, %arg8: memref<1x1x128xf32, #tpu.memory_space<vmem>>, %arg9: memref<1x128x256xf32, #tpu.memory_space<vmem>>, %arg10: memref<1x1x256xf32, #tpu.memory_space<vmem>>, %arg11: memref<1x256x128xf32, #tpu.memory_space<vmem>>, %arg12: memref<1x1x128xf32, #tpu.memory_space<vmem>>, %arg13: memref<2x128xf32, #tpu.memory_space<vmem>>, %arg14: memref<128x256xf32, #tpu.memory_space<vmem>>, %arg15: memref<1x256xf32, #tpu.memory_space<vmem>>, %arg16: memref<32x256xf32, #tpu.memory_space<vmem>>, %arg17: memref<32x128xf32, #tpu.memory_space<vmem>>) attributes {dimension_semantics = [#tpu.dimension_semantics<arbitrary>], iteration_bounds = array<i64: 3>, scalar_prefetch = 0 : i64, scratch_operands = 1 : i64, tpu.core_type = #tpu.core_type<tc>, window_params = [{pipeline_mode = #tpu.pipeline_mode<synchronous>, transform_indices = @transform_0, window_bounds = array<i64: 32, 128>}, {pipeline_mode = #tpu.pipeline_mode<synchronous>, transform_indices = @transform_1, window_bounds = array<i64: 32, 128>}, {pipeline_mode = #tpu.pipeline_mode<synchronous>, transform_indices = @transform_2, window_bounds = array<i64: 2, 16, 16>}, {transform_indices = @transform_3, window_bounds = array<i64: 1, 4, 128>}, {transform_indices = @transform_4, window_bounds = array<i64: 1, 128, 384>}, {transform_indices = @transform_5, window_bounds = array<i64: 1, 1, 384>}, {transform_indices = @transform_6, window_bounds = array<i64: 1, 128, 128>}, {transform_indices = @transform_7, window_bounds = array<i64: 1, 1, 128>}, {transform_indices = @transform_8, window_bounds = array<i64: 1, 128, 256>}, {transform_indices = @transform_9, window_bounds = array<i64: 1, 1, 256>}, {transform_indices = @transform_10, window_bounds = array<i64: 1, 256, 128>}, {transform_indices = @transform_11, window_bounds = array<i64: 1, 1, 128>}, {pipeline_mode = #tpu.pipeline_mode<synchronous>, transform_indices = @transform_12, window_bounds = array<i64: 2, 128>}, {pipeline_mode = #tpu.pipeline_mode<synchronous>, transform_indices = @transform_13, window_bounds = array<i64: 128, 256>}, {pipeline_mode = #tpu.pipeline_mode<synchronous>, transform_indices = @transform_14, window_bounds = array<i64: 1, 256>}, {pipeline_mode = #tpu.pipeline_mode<synchronous>, transform_indices = @transform_15, window_bounds = array<i64: 32, 256>}]} {
    %c0_i32 = arith.constant 0 : i32
    %0 = arith.cmpi eq, %arg0, %c0_i32 : i32
    %1 = arith.extui %0 : i1 to i32
    %c0_i32_0 = arith.constant 0 : i32
    %2 = arith.cmpi ne, %1, %c0_i32_0 : i32
    scf.if %2 {
      %c0 = arith.constant 0 : index
      %c0_4 = arith.constant 0 : index
      %9 = vector.load %arg1[%c0, %c0_4] : memref<32x128xf32, #tpu.memory_space<vmem>>, vector<32x128xf32>
      %cst = arith.constant 11.3137083 : f32
      %10 = vector.broadcast %cst : f32 to vector<32x128xf32>
      %11 = arith.mulf %9, %10 : vector<32x128xf32>
      %c0_5 = arith.constant 0 : index
      %c0_6 = arith.constant 0 : index
      %12 = vector.load %arg2[%c0_5, %c0_6] : memref<32x128xf32, #tpu.memory_space<vmem>>, vector<32x128xf32>
      %13 = arith.addf %11, %12 : vector<32x128xf32>
      %c0_7 = arith.constant 0 : index
      %c0_8 = arith.constant 0 : index
      %14 = vector.load %arg17[%c0_7, %c0_8] : memref<32x128xf32, #tpu.memory_space<vmem>>, vector<32x128xf32>
      tpu.vector_store %arg17[%c0_7, %c0_8], %13 {strides = array<i32>} : memref<32x128xf32, #tpu.memory_space<vmem>>, vector<32x128xf32>,
    } else {
    }
    %c2_i32 = arith.constant 2 : i32
    %3 = arith.cmpi slt, %arg0, %c2_i32 : i32
    %4 = arith.extui %3 : i1 to i32
    %c0_i32_1 = arith.constant 0 : i32
    %5 = arith.cmpi ne, %4, %c0_i32_1 : i32
    scf.if %5 {
      %c0 = arith.constant 0 : index
      %c0_4 = arith.constant 0 : index
      %9 = vector.load %arg17[%c0, %c0_4] : memref<32x128xf32, #tpu.memory_space<vmem>>, vector<32x128xf32>
      %c0_5 = arith.constant 0 : index
      %c0_6 = arith.constant 0 : index
      %c0_7 = arith.constant 0 : index
      %10 = vector.load %arg4[%c0_5, %c0_6, %c0_7] : memref<1x4x128xf32, #tpu.memory_space<vmem>>, vector<1x4x128xf32>
      %11 = vector.shape_cast %10 : vector<1x4x128xf32> to vector<4x128xf32>
      %12 = vector.extract_strided_slice %11 {offsets = [0, 0], sizes = [1, 128], strides = [1, 1]} : vector<4x128xf32> to vector<1x128xf32>
      %13 = vector.extract_strided_slice %11 {offsets = [1, 0], sizes = [1, 128], strides = [1, 1]} : vector<4x128xf32> to vector<1x128xf32>
      %cst = arith.constant dense<0.000000e+00> : vector<32xf32>
      %14 = vector.multi_reduction <add>, %9, %cst [1] : vector<32x128xf32> to vector<32xf32>
      %15 = vector.shape_cast %14 : vector<32xf32> to vector<32x1xf32>
      %cst_8 = arith.constant 1.280000e+02 : f32
      %16 = vector.broadcast %cst_8 : f32 to vector<32x1xf32>
      %17 = arith.divf %15, %16 : vector<32x1xf32>
      %18 = vector.broadcast %17 : vector<32x1xf32> to vector<32x128xf32>
      %19 = arith.subf %9, %18 : vector<32x128xf32>
      %20 = arith.mulf %19, %19 : vector<32x128xf32>
      %cst_9 = arith.constant dense<0.000000e+00> : vector<32xf32>
      %21 = vector.multi_reduction <add>, %20, %cst_9 [1] : vector<32x128xf32> to vector<32xf32>
      %22 = vector.shape_cast %21 : vector<32xf32> to vector<32x1xf32>
      %cst_10 = arith.constant 1.280000e+02 : f32
      %23 = vector.broadcast %cst_10 : f32 to vector<32x1xf32>
      %24 = arith.divf %22, %23 : vector<32x1xf32>
      %cst_11 = arith.constant 9.99999997E-7 : f32
      %25 = vector.broadcast %cst_11 : f32 to vector<32x1xf32>
      %26 = arith.addf %24, %25 : vector<32x1xf32>
      %27 = math.rsqrt %26 : vector<32x1xf32>
      %28 = vector.broadcast %27 : vector<32x1xf32> to vector<32x128xf32>
      %29 = arith.mulf %19, %28 : vector<32x128xf32>
      %30 = vector.broadcast %12 : vector<1x128xf32> to vector<32x128xf32>
      %31 = arith.mulf %29, %30 : vector<32x128xf32>
      %32 = vector.broadcast %13 : vector<1x128xf32> to vector<32x128xf32>
      %33 = arith.addf %31, %32 : vector<32x128xf32>
      %c0_12 = arith.constant 0 : index
      %c0_13 = arith.constant 0 : index
      %c0_14 = arith.constant 0 : index
      %34 = vector.load %arg5[%c0_12, %c0_13, %c0_14] : memref<1x128x384xf32, #tpu.memory_space<vmem>>, vector<1x128x384xf32>
      %35 = vector.shape_cast %34 : vector<1x128x384xf32> to vector<128x384xf32>
      %cst_15 = arith.constant dense<0.000000e+00> : vector<32x384xf32>
      %36 = tpu.matmul %33, %35, %cst_15 {dimension_numbers = #tpu.dot_dimension_numbers<[1], [0], [0], [1], [0, 0, 1, 1], [], []>} : vector<32x128xf32>, vector<128x384xf32>, vector<32x384xf32> -> vector<32x384xf32>
      %c0_16 = arith.constant 0 : index
      %c0_17 = arith.constant 0 : index
      %c0_18 = arith.constant 0 : index
      %37 = vector.load %arg6[%c0_16, %c0_17, %c0_18] : memref<1x1x384xf32, #tpu.memory_space<vmem>>, vector<1x1x384xf32>
      %38 = vector.shape_cast %37 : vector<1x1x384xf32> to vector<1x384xf32>
      %39 = vector.broadcast %38 : vector<1x384xf32> to vector<32x384xf32>
      %40 = arith.addf %36, %39 : vector<32x384xf32>
      %41 = vector.extract_strided_slice %40 {offsets = [0, 0], sizes = [32, 128], strides = [1, 1]} : vector<32x384xf32> to vector<32x128xf32>
      %cst_19 = arith.constant 0.176776692 : f32
      %42 = vector.broadcast %cst_19 : f32 to vector<32x128xf32>
      %43 = arith.mulf %41, %42 : vector<32x128xf32>
      %44 = vector.shape_cast %43 : vector<32x128xf32> to vector<2x16x128xf32>
      %45 = vector.extract_strided_slice %40 {offsets = [0, 128], sizes = [32, 128], strides = [1, 1]} : vector<32x384xf32> to vector<32x128xf32>
      %46 = vector.shape_cast %45 : vector<32x128xf32> to vector<2x16x128xf32>
      %47 = vector.extract_strided_slice %40 {offsets = [0, 256], sizes = [32, 128], strides = [1, 1]} : vector<32x384xf32> to vector<32x128xf32>
      %48 = vector.shape_cast %47 : vector<32x128xf32> to vector<2x16x128xf32>
      %c0_20 = arith.constant 0 : index
      %c0_21 = arith.constant 0 : index
      %c0_22 = arith.constant 0 : index
      %49 = vector.load %arg3[%c0_20, %c0_21, %c0_22] : memref<2x16x16xf32, #tpu.memory_space<vmem>>, vector<2x16x16xf32>
      %50 = vector.extract_strided_slice %44 {offsets = [0, 0, 0], sizes = [2, 16, 32], strides = [1, 1, 1]} : vector<2x16x128xf32> to vector<2x16x32xf32>
      %51 = vector.extract_strided_slice %46 {offsets = [0, 0, 0], sizes = [2, 16, 32], strides = [1, 1, 1]} : vector<2x16x128xf32> to vector<2x16x32xf32>
      "tpu.trace_start"() <{level = 10 : i32, message = "bqd,bkd->bqk"}> : () -> ()
      %cst_23 = arith.constant dense<0.000000e+00> : vector<2x16x16xf32>
      %52 = tpu.matmul %50, %51, %cst_23 {dimension_numbers = #tpu.dot_dimension_numbers<[2], [2], [1], [1], [0, 0, 0, 1, 1, 1], [0], [0]>} : vector<2x16x32xf32>, vector<2x16x32xf32>, vector<2x16x16xf32> -> vector<2x16x16xf32>
      "tpu.trace_stop"() : () -> ()
      %53 = arith.addf %52, %49 : vector<2x16x16xf32>
      %cst_24 = arith.constant dense<0xFF800000> : vector<2x16xf32>
      %54 = vector.multi_reduction <maximumf>, %53, %cst_24 [2] : vector<2x16x16xf32> to vector<2x16xf32>
      %55 = vector.shape_cast %54 : vector<2x16xf32> to vector<2x16x1xf32>
      %56 = vector.broadcast %55 : vector<2x16x1xf32> to vector<2x16x16xf32>
      %57 = arith.subf %53, %56 : vector<2x16x16xf32>
      %58 = math.exp %57 : vector<2x16x16xf32>
      %cst_25 = arith.constant dense<0.000000e+00> : vector<2x16xf32>
      %59 = vector.multi_reduction <add>, %58, %cst_25 [2] : vector<2x16x16xf32> to vector<2x16xf32>
      %60 = vector.shape_cast %59 : vector<2x16xf32> to vector<2x16x1xf32>
      %61 = tpu.reciprocal %60 {approx = true} : vector<2x16x1xf32> -> vector<2x16x1xf32>
      %62 = vector.broadcast %61 : vector<2x16x1xf32> to vector<2x16x16xf32>
      %63 = arith.mulf %58, %62 : vector<2x16x16xf32>
      %64 = vector.extract_strided_slice %48 {offsets = [0, 0, 0], sizes = [2, 16, 32], strides = [1, 1, 1]} : vector<2x16x128xf32> to vector<2x16x32xf32>
      "tpu.trace_start"() <{level = 10 : i32, message = "bqk,bkd->bqd"}> : () -> ()
      %cst_26 = arith.constant dense<0.000000e+00> : vector<2x16x32xf32>
      %65 = tpu.matmul %63, %64, %cst_26 {dimension_numbers = #tpu.dot_dimension_numbers<[2], [1], [1], [2], [0, 0, 0, 1, 1, 2], [0], [0]>} : vector<2x16x16xf32>, vector<2x16x32xf32>, vector<2x16x32xf32> -> vector<2x16x32xf32>
      "tpu.trace_stop"() : () -> ()
      %66 = vector.extract_strided_slice %44 {offsets = [0, 0, 32], sizes = [2, 16, 32], strides = [1, 1, 1]} : vector<2x16x128xf32> to vector<2x16x32xf32>
      %67 = vector.extract_strided_slice %46 {offsets = [0, 0, 32], sizes = [2, 16, 32], strides = [1, 1, 1]} : vector<2x16x128xf32> to vector<2x16x32xf32>
      "tpu.trace_start"() <{level = 10 : i32, message = "bqd,bkd->bqk"}> : () -> ()
      %cst_27 = arith.constant dense<0.000000e+00> : vector<2x16x16xf32>
      %68 = tpu.matmul %66, %67, %cst_27 {dimension_numbers = #tpu.dot_dimension_numbers<[2], [2], [1], [1], [0, 0, 0, 1, 1, 1], [0], [0]>} : vector<2x16x32xf32>, vector<2x16x32xf32>, vector<2x16x16xf32> -> vector<2x16x16xf32>
      "tpu.trace_stop"() : () -> ()
      %69 = arith.addf %68, %49 : vector<2x16x16xf32>
      %cst_28 = arith.constant dense<0xFF800000> : vector<2x16xf32>
      %70 = vector.multi_reduction <maximumf>, %69, %cst_28 [2] : vector<2x16x16xf32> to vector<2x16xf32>
      %71 = vector.shape_cast %70 : vector<2x16xf32> to vector<2x16x1xf32>
      %72 = vector.broadcast %71 : vector<2x16x1xf32> to vector<2x16x16xf32>
      %73 = arith.subf %69, %72 : vector<2x16x16xf32>
      %74 = math.exp %73 : vector<2x16x16xf32>
      %cst_29 = arith.constant dense<0.000000e+00> : vector<2x16xf32>
      %75 = vector.multi_reduction <add>, %74, %cst_29 [2] : vector<2x16x16xf32> to vector<2x16xf32>
      %76 = vector.shape_cast %75 : vector<2x16xf32> to vector<2x16x1xf32>
      %77 = tpu.reciprocal %76 {approx = true} : vector<2x16x1xf32> -> vector<2x16x1xf32>
      %78 = vector.broadcast %77 : vector<2x16x1xf32> to vector<2x16x16xf32>
      %79 = arith.mulf %74, %78 : vector<2x16x16xf32>
      %80 = vector.extract_strided_slice %48 {offsets = [0, 0, 32], sizes = [2, 16, 32], strides = [1, 1, 1]} : vector<2x16x128xf32> to vector<2x16x32xf32>
      "tpu.trace_start"() <{level = 10 : i32, message = "bqk,bkd->bqd"}> : () -> ()
      %cst_30 = arith.constant dense<0.000000e+00> : vector<2x16x32xf32>
      %81 = tpu.matmul %79, %80, %cst_30 {dimension_numbers = #tpu.dot_dimension_numbers<[2], [1], [1], [2], [0, 0, 0, 1, 1, 2], [0], [0]>} : vector<2x16x16xf32>, vector<2x16x32xf32>, vector<2x16x32xf32> -> vector<2x16x32xf32>
      "tpu.trace_stop"() : () -> ()
      %82 = vector.extract_strided_slice %44 {offsets = [0, 0, 64], sizes = [2, 16, 32], strides = [1, 1, 1]} : vector<2x16x128xf32> to vector<2x16x32xf32>
      %83 = vector.extract_strided_slice %46 {offsets = [0, 0, 64], sizes = [2, 16, 32], strides = [1, 1, 1]} : vector<2x16x128xf32> to vector<2x16x32xf32>
      "tpu.trace_start"() <{level = 10 : i32, message = "bqd,bkd->bqk"}> : () -> ()
      %cst_31 = arith.constant dense<0.000000e+00> : vector<2x16x16xf32>
      %84 = tpu.matmul %82, %83, %cst_31 {dimension_numbers = #tpu.dot_dimension_numbers<[2], [2], [1], [1], [0, 0, 0, 1, 1, 1], [0], [0]>} : vector<2x16x32xf32>, vector<2x16x32xf32>, vector<2x16x16xf32> -> vector<2x16x16xf32>
      "tpu.trace_stop"() : () -> ()
      %85 = arith.addf %84, %49 : vector<2x16x16xf32>
      %cst_32 = arith.constant dense<0xFF800000> : vector<2x16xf32>
      %86 = vector.multi_reduction <maximumf>, %85, %cst_32 [2] : vector<2x16x16xf32> to vector<2x16xf32>
      %87 = vector.shape_cast %86 : vector<2x16xf32> to vector<2x16x1xf32>
      %88 = vector.broadcast %87 : vector<2x16x1xf32> to vector<2x16x16xf32>
      %89 = arith.subf %85, %88 : vector<2x16x16xf32>
      %90 = math.exp %89 : vector<2x16x16xf32>
      %cst_33 = arith.constant dense<0.000000e+00> : vector<2x16xf32>
      %91 = vector.multi_reduction <add>, %90, %cst_33 [2] : vector<2x16x16xf32> to vector<2x16xf32>
      %92 = vector.shape_cast %91 : vector<2x16xf32> to vector<2x16x1xf32>
      %93 = tpu.reciprocal %92 {approx = true} : vector<2x16x1xf32> -> vector<2x16x1xf32>
      %94 = vector.broadcast %93 : vector<2x16x1xf32> to vector<2x16x16xf32>
      %95 = arith.mulf %90, %94 : vector<2x16x16xf32>
      %96 = vector.extract_strided_slice %48 {offsets = [0, 0, 64], sizes = [2, 16, 32], strides = [1, 1, 1]} : vector<2x16x128xf32> to vector<2x16x32xf32>
      "tpu.trace_start"() <{level = 10 : i32, message = "bqk,bkd->bqd"}> : () -> ()
      %cst_34 = arith.constant dense<0.000000e+00> : vector<2x16x32xf32>
      %97 = tpu.matmul %95, %96, %cst_34 {dimension_numbers = #tpu.dot_dimension_numbers<[2], [1], [1], [2], [0, 0, 0, 1, 1, 2], [0], [0]>} : vector<2x16x16xf32>, vector<2x16x32xf32>, vector<2x16x32xf32> -> vector<2x16x32xf32>
      "tpu.trace_stop"() : () -> ()
      %98 = vector.extract_strided_slice %44 {offsets = [0, 0, 96], sizes = [2, 16, 32], strides = [1, 1, 1]} : vector<2x16x128xf32> to vector<2x16x32xf32>
      %99 = vector.extract_strided_slice %46 {offsets = [0, 0, 96], sizes = [2, 16, 32], strides = [1, 1, 1]} : vector<2x16x128xf32> to vector<2x16x32xf32>
      "tpu.trace_start"() <{level = 10 : i32, message = "bqd,bkd->bqk"}> : () -> ()
      %cst_35 = arith.constant dense<0.000000e+00> : vector<2x16x16xf32>
      %100 = tpu.matmul %98, %99, %cst_35 {dimension_numbers = #tpu.dot_dimension_numbers<[2], [2], [1], [1], [0, 0, 0, 1, 1, 1], [0], [0]>} : vector<2x16x32xf32>, vector<2x16x32xf32>, vector<2x16x16xf32> -> vector<2x16x16xf32>
      "tpu.trace_stop"() : () -> ()
      %101 = arith.addf %100, %49 : vector<2x16x16xf32>
      %cst_36 = arith.constant dense<0xFF800000> : vector<2x16xf32>
      %102 = vector.multi_reduction <maximumf>, %101, %cst_36 [2] : vector<2x16x16xf32> to vector<2x16xf32>
      %103 = vector.shape_cast %102 : vector<2x16xf32> to vector<2x16x1xf32>
      %104 = vector.broadcast %103 : vector<2x16x1xf32> to vector<2x16x16xf32>
      %105 = arith.subf %101, %104 : vector<2x16x16xf32>
      %106 = math.exp %105 : vector<2x16x16xf32>
      %cst_37 = arith.constant dense<0.000000e+00> : vector<2x16xf32>
      %107 = vector.multi_reduction <add>, %106, %cst_37 [2] : vector<2x16x16xf32> to vector<2x16xf32>
      %108 = vector.shape_cast %107 : vector<2x16xf32> to vector<2x16x1xf32>
      %109 = tpu.reciprocal %108 {approx = true} : vector<2x16x1xf32> -> vector<2x16x1xf32>
      %110 = vector.broadcast %109 : vector<2x16x1xf32> to vector<2x16x16xf32>
      %111 = arith.mulf %106, %110 : vector<2x16x16xf32>
      %112 = vector.extract_strided_slice %48 {offsets = [0, 0, 96], sizes = [2, 16, 32], strides = [1, 1, 1]} : vector<2x16x128xf32> to vector<2x16x32xf32>
      "tpu.trace_start"() <{level = 10 : i32, message = "bqk,bkd->bqd"}> : () -> ()
      %cst_38 = arith.constant dense<0.000000e+00> : vector<2x16x32xf32>
      %113 = tpu.matmul %111, %112, %cst_38 {dimension_numbers = #tpu.dot_dimension_numbers<[2], [1], [1], [2], [0, 0, 0, 1, 1, 2], [0], [0]>} : vector<2x16x16xf32>, vector<2x16x32xf32>, vector<2x16x32xf32> -> vector<2x16x32xf32>
      "tpu.trace_stop"() : () -> ()
      %114 = tpu.concatenate %65, %81, %97, %113 in 2 : vector<2x16x32xf32>, vector<2x16x32xf32>, vector<2x16x32xf32>, vector<2x16x32xf32> -> vector<2x16x128xf32>
      %115 = vector.shape_cast %114 : vector<2x16x128xf32> to vector<32x128xf32>
      %c0_39 = arith.constant 0 : index
      %c0_40 = arith.constant 0 : index
      %c0_41 = arith.constant 0 : index
      %116 = vector.load %arg7[%c0_39, %c0_40, %c0_41] : memref<1x128x128xf32, #tpu.memory_space<vmem>>, vector<1x128x128xf32>
      %117 = vector.shape_cast %116 : vector<1x128x128xf32> to vector<128x128xf32>
      %cst_42 = arith.constant dense<0.000000e+00> : vector<32x128xf32>
      %118 = tpu.matmul %115, %117, %cst_42 {dimension_numbers = #tpu.dot_dimension_numbers<[1], [0], [0], [1], [0, 0, 1, 1], [], []>} : vector<32x128xf32>, vector<128x128xf32>, vector<32x128xf32> -> vector<32x128xf32>
      %119 = arith.addf %9, %118 : vector<32x128xf32>
      %c0_43 = arith.constant 0 : index
      %c0_44 = arith.constant 0 : index
      %c0_45 = arith.constant 0 : index
      %120 = vector.load %arg8[%c0_43, %c0_44, %c0_45] : memref<1x1x128xf32, #tpu.memory_space<vmem>>, vector<1x1x128xf32>
      %121 = vector.shape_cast %120 : vector<1x1x128xf32> to vector<1x128xf32>
      %122 = vector.broadcast %121 : vector<1x128xf32> to vector<32x128xf32>
      %123 = arith.addf %119, %122 : vector<32x128xf32>
      %124 = vector.extract_strided_slice %11 {offsets = [2, 0], sizes = [1, 128], strides = [1, 1]} : vector<4x128xf32> to vector<1x128xf32>
      %125 = vector.extract_strided_slice %11 {offsets = [3, 0], sizes = [1, 128], strides = [1, 1]} : vector<4x128xf32> to vector<1x128xf32>
      %cst_46 = arith.constant dense<0.000000e+00> : vector<32xf32>
      %126 = vector.multi_reduction <add>, %123, %cst_46 [1] : vector<32x128xf32> to vector<32xf32>
      %127 = vector.shape_cast %126 : vector<32xf32> to vector<32x1xf32>
      %cst_47 = arith.constant 1.280000e+02 : f32
      %128 = vector.broadcast %cst_47 : f32 to vector<32x1xf32>
      %129 = arith.divf %127, %128 : vector<32x1xf32>
      %130 = vector.broadcast %129 : vector<32x1xf32> to vector<32x128xf32>
      %131 = arith.subf %123, %130 : vector<32x128xf32>
      %132 = arith.mulf %131, %131 : vector<32x128xf32>
      %cst_48 = arith.constant dense<0.000000e+00> : vector<32xf32>
      %133 = vector.multi_reduction <add>, %132, %cst_48 [1] : vector<32x128xf32> to vector<32xf32>
      %134 = vector.shape_cast %133 : vector<32xf32> to vector<32x1xf32>
      %cst_49 = arith.constant 1.280000e+02 : f32
      %135 = vector.broadcast %cst_49 : f32 to vector<32x1xf32>
      %136 = arith.divf %134, %135 : vector<32x1xf32>
      %cst_50 = arith.constant 9.99999997E-7 : f32
      %137 = vector.broadcast %cst_50 : f32 to vector<32x1xf32>
      %138 = arith.addf %136, %137 : vector<32x1xf32>
      %139 = math.rsqrt %138 : vector<32x1xf32>
      %140 = vector.broadcast %139 : vector<32x1xf32> to vector<32x128xf32>
      %141 = arith.mulf %131, %140 : vector<32x128xf32>
      %142 = vector.broadcast %124 : vector<1x128xf32> to vector<32x128xf32>
      %143 = arith.mulf %141, %142 : vector<32x128xf32>
      %144 = vector.broadcast %125 : vector<1x128xf32> to vector<32x128xf32>
      %145 = arith.addf %143, %144 : vector<32x128xf32>
      %c0_51 = arith.constant 0 : index
      %c0_52 = arith.constant 0 : index
      %c0_53 = arith.constant 0 : index
      %146 = vector.load %arg9[%c0_51, %c0_52, %c0_53] : memref<1x128x256xf32, #tpu.memory_space<vmem>>, vector<1x128x256xf32>
      %147 = vector.shape_cast %146 : vector<1x128x256xf32> to vector<128x256xf32>
      %cst_54 = arith.constant dense<0.000000e+00> : vector<32x256xf32>
      %148 = tpu.matmul %145, %147, %cst_54 {dimension_numbers = #tpu.dot_dimension_numbers<[1], [0], [0], [1], [0, 0, 1, 1], [], []>} : vector<32x128xf32>, vector<128x256xf32>, vector<32x256xf32> -> vector<32x256xf32>
      %c0_55 = arith.constant 0 : index
      %c0_56 = arith.constant 0 : index
      %c0_57 = arith.constant 0 : index
      %149 = vector.load %arg10[%c0_55, %c0_56, %c0_57] : memref<1x1x256xf32, #tpu.memory_space<vmem>>, vector<1x1x256xf32>
      %150 = vector.shape_cast %149 : vector<1x1x256xf32> to vector<1x256xf32>
      %151 = vector.broadcast %150 : vector<1x256xf32> to vector<32x256xf32>
      %152 = arith.addf %148, %151 : vector<32x256xf32>
      %cst_58 = arith.constant 0.000000e+00 : f32
      %153 = vector.broadcast %cst_58 : f32 to vector<32x256xf32>
      %154 = arith.maximumf %152, %153 : vector<32x256xf32>
      %c0_59 = arith.constant 0 : index
      %c0_60 = arith.constant 0 : index
      %c0_61 = arith.constant 0 : index
      %155 = vector.load %arg11[%c0_59, %c0_60, %c0_61] : memref<1x256x128xf32, #tpu.memory_space<vmem>>, vector<1x256x128xf32>
      %156 = vector.shape_cast %155 : vector<1x256x128xf32> to vector<256x128xf32>
      %cst_62 = arith.constant dense<0.000000e+00> : vector<32x128xf32>
      %157 = tpu.matmul %154, %156, %cst_62 {dimension_numbers = #tpu.dot_dimension_numbers<[1], [0], [0], [1], [0, 0, 1, 1], [], []>} : vector<32x256xf32>, vector<256x128xf32>, vector<32x128xf32> -> vector<32x128xf32>
      %158 = arith.addf %123, %157 : vector<32x128xf32>
      %c0_63 = arith.constant 0 : index
      %c0_64 = arith.constant 0 : index
      %c0_65 = arith.constant 0 : index
      %159 = vector.load %arg12[%c0_63, %c0_64, %c0_65] : memref<1x1x128xf32, #tpu.memory_space<vmem>>, vector<1x1x128xf32>
      %160 = vector.shape_cast %159 : vector<1x1x128xf32> to vector<1x128xf32>
      %161 = vector.broadcast %160 : vector<1x128xf32> to vector<32x128xf32>
      %162 = arith.addf %158, %161 : vector<32x128xf32>
      %c0_66 = arith.constant 0 : index
      %c0_67 = arith.constant 0 : index
      %163 = vector.load %arg17[%c0_66, %c0_67] : memref<32x128xf32, #tpu.memory_space<vmem>>, vector<32x128xf32>
      tpu.vector_store %arg17[%c0_66, %c0_67], %162 {strides = array<i32>} : memref<32x128xf32, #tpu.memory_space<vmem>>, vector<32x128xf32>,
    } else {
    }
    %c2_i32_2 = arith.constant 2 : i32
    %6 = arith.cmpi eq, %arg0, %c2_i32_2 : i32
    %7 = arith.extui %6 : i1 to i32
    %c0_i32_3 = arith.constant 0 : i32
    %8 = arith.cmpi ne, %7, %c0_i32_3 : i32
    scf.if %8 {
      %c0 = arith.constant 0 : index
      %c0_4 = arith.constant 0 : index
      %9 = vector.load %arg13[%c0, %c0_4] : memref<2x128xf32, #tpu.memory_space<vmem>>, vector<2x128xf32>
      %c0_5 = arith.constant 0 : index
      %c0_6 = arith.constant 0 : index
      %10 = vector.load %arg17[%c0_5, %c0_6] : memref<32x128xf32, #tpu.memory_space<vmem>>, vector<32x128xf32>
      %11 = vector.extract_strided_slice %9 {offsets = [0, 0], sizes = [1, 128], strides = [1, 1]} : vector<2x128xf32> to vector<1x128xf32>
      %12 = vector.extract_strided_slice %9 {offsets = [1, 0], sizes = [1, 128], strides = [1, 1]} : vector<2x128xf32> to vector<1x128xf32>
      %cst = arith.constant dense<0.000000e+00> : vector<32xf32>
      %13 = vector.multi_reduction <add>, %10, %cst [1] : vector<32x128xf32> to vector<32xf32>
      %14 = vector.shape_cast %13 : vector<32xf32> to vector<32x1xf32>
      %cst_7 = arith.constant 1.280000e+02 : f32
      %15 = vector.broadcast %cst_7 : f32 to vector<32x1xf32>
      %16 = arith.divf %14, %15 : vector<32x1xf32>
      %17 = vector.broadcast %16 : vector<32x1xf32> to vector<32x128xf32>
      %18 = arith.subf %10, %17 : vector<32x128xf32>
      %19 = arith.mulf %18, %18 : vector<32x128xf32>
      %cst_8 = arith.constant dense<0.000000e+00> : vector<32xf32>
      %20 = vector.multi_reduction <add>, %19, %cst_8 [1] : vector<32x128xf32> to vector<32xf32>
      %21 = vector.shape_cast %20 : vector<32xf32> to vector<32x1xf32>
      %cst_9 = arith.constant 1.280000e+02 : f32
      %22 = vector.broadcast %cst_9 : f32 to vector<32x1xf32>
      %23 = arith.divf %21, %22 : vector<32x1xf32>
      %cst_10 = arith.constant 9.99999997E-7 : f32
      %24 = vector.broadcast %cst_10 : f32 to vector<32x1xf32>
      %25 = arith.addf %23, %24 : vector<32x1xf32>
      %26 = math.rsqrt %25 : vector<32x1xf32>
      %27 = vector.broadcast %26 : vector<32x1xf32> to vector<32x128xf32>
      %28 = arith.mulf %18, %27 : vector<32x128xf32>
      %29 = vector.broadcast %11 : vector<1x128xf32> to vector<32x128xf32>
      %30 = arith.mulf %28, %29 : vector<32x128xf32>
      %31 = vector.broadcast %12 : vector<1x128xf32> to vector<32x128xf32>
      %32 = arith.addf %30, %31 : vector<32x128xf32>
      %c0_11 = arith.constant 0 : index
      %c0_12 = arith.constant 0 : index
      %33 = vector.load %arg14[%c0_11, %c0_12] : memref<128x256xf32, #tpu.memory_space<vmem>>, vector<128x256xf32>
      %cst_13 = arith.constant dense<0.000000e+00> : vector<32x256xf32>
      %34 = tpu.matmul %32, %33, %cst_13 {dimension_numbers = #tpu.dot_dimension_numbers<[1], [0], [0], [1], [0, 0, 1, 1], [], []>} : vector<32x128xf32>, vector<128x256xf32>, vector<32x256xf32> -> vector<32x256xf32>
      %c0_14 = arith.constant 0 : index
      %c0_15 = arith.constant 0 : index
      %35 = vector.load %arg15[%c0_14, %c0_15] : memref<1x256xf32, #tpu.memory_space<vmem>>, vector<1x256xf32>
      %36 = vector.broadcast %35 : vector<1x256xf32> to vector<32x256xf32>
      %37 = arith.addf %34, %36 : vector<32x256xf32>
      %c0_16 = arith.constant 0 : index
      %c0_17 = arith.constant 0 : index
      %38 = vector.load %arg16[%c0_16, %c0_17] : memref<32x256xf32, #tpu.memory_space<vmem>>, vector<32x256xf32>
      tpu.vector_store %arg16[%c0_16, %c0_17], %37 {strides = array<i32>} : memref<32x256xf32, #tpu.memory_space<vmem>>, vector<32x256xf32>,
    } else {
    }
    return
  }
  func.func @transform_0(%arg0: i32) -> (i32, i32) {
    %c0_i32 = arith.constant 0 : i32
    %c0_i32_0 = arith.constant 0 : i32
    %c0_i32_1 = arith.constant 0 : i32
    return %c0_i32, %c0_i32_0 : i32, i32
  }
  func.func @transform_1(%arg0: i32) -> (i32, i32) {
    %c0_i32 = arith.constant 0 : i32
    %c0_i32_0 = arith.constant 0 : i32
    %c0_i32_1 = arith.constant 0 : i32
    return %c0_i32, %c0_i32_0 : i32, i32
  }
  func.func @transform_2(%arg0: i32) -> (i32, i32, i32) {
    %c0_i32 = arith.constant 0 : i32
    %c0_i32_0 = arith.constant 0 : i32
    %c0_i32_1 = arith.constant 0 : i32
    %c0_i32_2 = arith.constant 0 : i32
    return %c0_i32, %c0_i32_0, %c0_i32_1 : i32, i32, i32
  }
  func.func @transform_3(%arg0: i32) -> (i32, i32, i32) {
    %c1_i32 = arith.constant 1 : i32
    %0 = arith.minsi %arg0, %c1_i32 : i32
    %c0_i32 = arith.constant 0 : i32
    %c0_i32_0 = arith.constant 0 : i32
    %c0_i32_1 = arith.constant 0 : i32
    return %0, %c0_i32, %c0_i32_0 : i32, i32, i32
  }
  func.func @transform_4(%arg0: i32) -> (i32, i32, i32) {
    %c1_i32 = arith.constant 1 : i32
    %0 = arith.minsi %arg0, %c1_i32 : i32
    %c0_i32 = arith.constant 0 : i32
    %c0_i32_0 = arith.constant 0 : i32
    %c0_i32_1 = arith.constant 0 : i32
    return %0, %c0_i32, %c0_i32_0 : i32, i32, i32
  }
  func.func @transform_5(%arg0: i32) -> (i32, i32, i32) {
    %c1_i32 = arith.constant 1 : i32
    %0 = arith.minsi %arg0, %c1_i32 : i32
    %c0_i32 = arith.constant 0 : i32
    %c0_i32_0 = arith.constant 0 : i32
    %c0_i32_1 = arith.constant 0 : i32
    return %0, %c0_i32, %c0_i32_0 : i32, i32, i32
  }
  func.func @transform_6(%arg0: i32) -> (i32, i32, i32) {
    %c1_i32 = arith.constant 1 : i32
    %0 = arith.minsi %arg0, %c1_i32 : i32
    %c0_i32 = arith.constant 0 : i32
    %c0_i32_0 = arith.constant 0 : i32
    %c0_i32_1 = arith.constant 0 : i32
    return %0, %c0_i32, %c0_i32_0 : i32, i32, i32
  }
  func.func @transform_7(%arg0: i32) -> (i32, i32, i32) {
    %c1_i32 = arith.constant 1 : i32
    %0 = arith.minsi %arg0, %c1_i32 : i32
    %c0_i32 = arith.constant 0 : i32
    %c0_i32_0 = arith.constant 0 : i32
    %c0_i32_1 = arith.constant 0 : i32
    return %0, %c0_i32, %c0_i32_0 : i32, i32, i32
  }
  func.func @transform_8(%arg0: i32) -> (i32, i32, i32) {
    %c1_i32 = arith.constant 1 : i32
    %0 = arith.minsi %arg0, %c1_i32 : i32
    %c0_i32 = arith.constant 0 : i32
    %c0_i32_0 = arith.constant 0 : i32
    %c0_i32_1 = arith.constant 0 : i32
    return %0, %c0_i32, %c0_i32_0 : i32, i32, i32
  }
  func.func @transform_9(%arg0: i32) -> (i32, i32, i32) {
    %c1_i32 = arith.constant 1 : i32
    %0 = arith.minsi %arg0, %c1_i32 : i32
    %c0_i32 = arith.constant 0 : i32
    %c0_i32_0 = arith.constant 0 : i32
    %c0_i32_1 = arith.constant 0 : i32
    return %0, %c0_i32, %c0_i32_0 : i32, i32, i32
  }
  func.func @transform_10(%arg0: i32) -> (i32, i32, i32) {
    %c1_i32 = arith.constant 1 : i32
    %0 = arith.minsi %arg0, %c1_i32 : i32
    %c0_i32 = arith.constant 0 : i32
    %c0_i32_0 = arith.constant 0 : i32
    %c0_i32_1 = arith.constant 0 : i32
    return %0, %c0_i32, %c0_i32_0 : i32, i32, i32
  }
  func.func @transform_11(%arg0: i32) -> (i32, i32, i32) {
    %c1_i32 = arith.constant 1 : i32
    %0 = arith.minsi %arg0, %c1_i32 : i32
    %c0_i32 = arith.constant 0 : i32
    %c0_i32_0 = arith.constant 0 : i32
    %c0_i32_1 = arith.constant 0 : i32
    return %0, %c0_i32, %c0_i32_0 : i32, i32, i32
  }
  func.func @transform_12(%arg0: i32) -> (i32, i32) {
    %c0_i32 = arith.constant 0 : i32
    %c0_i32_0 = arith.constant 0 : i32
    %c0_i32_1 = arith.constant 0 : i32
    return %c0_i32, %c0_i32_0 : i32, i32
  }
  func.func @transform_13(%arg0: i32) -> (i32, i32) {
    %c0_i32 = arith.constant 0 : i32
    %c0_i32_0 = arith.constant 0 : i32
    %c0_i32_1 = arith.constant 0 : i32
    return %c0_i32, %c0_i32_0 : i32, i32
  }
  func.func @transform_14(%arg0: i32) -> (i32, i32) {
    %c0_i32 = arith.constant 0 : i32
    %c0_i32_0 = arith.constant 0 : i32
    %c0_i32_1 = arith.constant 0 : i32
    return %c0_i32, %c0_i32_0 : i32, i32
  }
  func.func @transform_15(%arg0: i32) -> (i32, i32) {
    %c0_i32 = arith.constant 0 : i32
    %c0_i32_0 = arith.constant 0 : i32
    %c0_i32_1 = arith.constant 0 : i32
    return %c0_i32, %c0_i32_0 : i32, i32
  }
}

</mosaic_0001>

<bundles_post_ra>
// kernel: ctrl_forward.1
= control target key start
LH: loop header
LB: loop body
LE: loop exit
PB: predicated region body
PF: predicated region fallthrough
CT: control target
= control target key end

     0   :  { %s5038_s0 = inlined_call_operand.vmem [shape: f32[32,128], index: 0, kind: input, shape index: {}]   ;;  %s5039_s1 = inlined_call_operand.vmem [shape: f32[32,128], index: 1, kind: input, shape index: {}]   ;;  %s5040_s2 = inlined_call_operand.vmem [shape: f32[2,16,16], index: 2, kind: input, shape index: {}]   ;;  %s5041_s3 = inlined_call_operand.vmem [shape: f32[2,4,128], index: 3, kind: input, shape index: {}]   ;;  %s5042_s4 = inlined_call_operand.vmem [shape: f32[2,128,384], index: 4, kind: input, shape index: {}]   ;;  %s5043_s5 = inlined_call_operand.vmem [shape: f32[2,1,384], index: 5, kind: input, shape index: {}]   ;;  %s5044_s6 = inlined_call_operand.vmem [shape: f32[2,128,128], index: 6, kind: input, shape index: {}]   ;;  %s5045_s7 = inlined_call_operand.vmem [shape: f32[2,1,128], index: 7, kind: input, shape index: {}]   ;;  %s5046_s8 = inlined_call_operand.vmem [shape: f32[2,128,256], index: 8, kind: input, shape index: {}]   ;;  %s5047_s9 = inlined_call_operand.vmem [shape: f32[2,1,256], index: 9, kind: input, shape index: {}]   ;;  %s5048_s10 = inlined_call_operand.vmem [shape: f32[2,256,128], index: 10, kind: input, shape index: {}]   ;;  %s5049_s11 = inlined_call_operand.vmem [shape: f32[2,1,128], index: 11, kind: input, shape index: {}]   ;;  %s5050_s12 = inlined_call_operand.vmem [shape: f32[2,128], index: 12, kind: input, shape index: {}]   ;;  %s5051_s13 = inlined_call_operand.vmem [shape: f32[128,256], index: 13, kind: input, shape index: {}]   ;;  %s5052_s14 = inlined_call_operand.vmem [shape: f32[1,256], index: 14, kind: input, shape index: {}]   ;;  %s5053_s15 = inlined_call_operand.hbm [shape: f32[32,256], index: 15, kind: output, shape index: {}]  }
   0x1   :  { %5056 = sst [smem:[#allocation7_spill]] %s5041_s3 }
   0x2   :  { %5057 = sst [smem:[#allocation8_spill]] %s5042_s4 }
   0x3   :  { %5058 = sst [smem:[#allocation9_spill]] %s5050_s12 }
   0x4   :  { %5059 = sst [smem:[#allocation10_spill]] %s5051_s13 }
   0x5   :  { %5060 = sst [smem:[#allocation11_spill]] %s5052_s14 }
   0x6   :  { %5061 = sst [smem:[#allocation12_spill]] %s5053_s15 }
   0x7   :  { %20 = vsyncpa [#allocation4], 0  ;;  %s4276_s18 = smov 0  }
   0x8 LB: > { %5062 = sst [smem:[#allocation6_spill]] %s4186_s18  ;;  %s4282_s19 = sadd.s32 4294967295, %s4186_s18   ;;  %s4186_s18 = sphi %s4276_s18, %s26_s18  }
   0x9   : > { %p3540_p0 = scmp.ge.s32.totalorder %s4186_s18, 1  ;;  %p578_p1 = scmp.lt.s32.totalorder %s4186_s18, 4 }
   0xb   : > { %p579_p2 = pnand %p3540_p0, %p578_p1 }
   0xc   : > { %p672_p3 = scmp.lt.s32.totalorder (!%p579_p2), %s4282_s19, 1  ;;  %s5063_s3 = sld [smem:[#allocation7_spill]] (!%p579_p2) }
   0xd   : > { %582 = sbr.rel (%p579_p2) target bundleno = 4660 (0x1234), region = 80  ;;  %s5064_s4 = sld [smem:[#allocation8_spill]] (!%p579_p2) }
   0xe   : > { %p3577_p4 = scmp.ne.s32.totalorder (!%p579_p2), %s4282_s19, 0 }
  0x12   : > { %s673_s20 = scalar_select %p672_p3, %s4282_s19, 1 }
  0x14   : > { %s5072_s20 = smov (!%p672_p3, %s673_s20), 1 }
  0x15   : > { %s3544_s21 = sshll.u32 %s5072_s20, 2  ;;  %s4005_s22 = smul.u32 384, %s5072_s20 }
  0x16   : > { %s4295_s25 = scalar_lea.vmem %s5063_s3, %s3544_s21  ;;  %s4006_s26 = smul.u32 3, %s5072_s20 }
  0x17   : > { %s4301_s29 = scalar_lea.vmem %s5064_s4, %s4005_s22  ;;  %s3634_s30 = sshll.u32 %s5072_s20, 7 }
  0x18   : > { %s4307_s18 = scalar_lea.vmem %s5043_s5, %s4006_s26  ;;  %s4312_s12 = scalar_lea.vmem %s5044_s6, %s3634_s30 }
  0x19   : > { %s3635_s3 = sshll.u32 %s5072_s20, 8  ;;  %s3568_s28 = sshll.u32 %s5072_s20, 1 }
  0x1a   : > { %s4322_s22 = scalar_lea.vmem %s5046_s8, %s3635_s3  ;;  %s4328_s26 = scalar_lea.vmem %s5047_s9, %s3568_s28 }
  0x1b   : > { %s4333_s15 = scalar_lea.vmem %s5048_s10, %s3635_s3  ;;  %s743_s21 = scalar_lea.vmem %s5049_s11, %s5072_s20 }
  0x1c   : > { %749 = sbr.rel (%p3577_p4) target bundleno = 41 (0x29), region = 84 }
  0x21   : > { %v750_v0 = vld [vmem:[%s5038_s0] sm:$0xff]  ;;  %v751_v2 = vld [vmem:[%s5038_s0 + $0x8] sm:$0xff]  ;;  %v752_v6 = vld [vmem:[%s5038_s0 + $0x10] sm:$0xff] }
  0x22   : > { %v758_v1 = vld [vmem:[%s5039_s1] sm:$0xff]  ;;  %v754_v3 = vmul.f32 11.313708, %v750_v0  ;;  %v755_v4 = vmul.f32 11.313708, %v751_v2  ;;  %v759_v5 = vld [vmem:[%s5039_s1 + $0x8] sm:$0xff] }
  0x23   : > { %v756_v7 = vmul.f32 11.313708, %v752_v6  ;;  %v760_v8 = vld [vmem:[%s5039_s1 + $0x10] sm:$0xff]  ;;  %v753_v9 = vld [vmem:[%s5038_s0 + $0x18] sm:$0xff] }
  0x24   : > { %v761_v10 = vld [vmem:[%s5039_s1 + $0x18] sm:$0xff]  ;;  %v762_v11 = vadd.f32 %v758_v1, %v754_v3  ;;  %v763_v12 = vadd.f32 %v759_v5, %v755_v4  ;;  %v757_v13 = vmul.f32 11.313708, %v753_v9 }
  0x25   : > { %v764_v14 = vadd.f32 %v760_v8, %v756_v7 }
  0x26   : > { %766 = vst [vmem:[#allocation2 + $0x10] sm:$0xff] %v762_v11  ;;  %767 = vst [vmem:[#allocation2] sm:$0xff] %v763_v12  ;;  %v765_v15 = vadd.f32 %v761_v10, %v757_v13 }
  0x27   : > { %768 = vst [vmem:[#allocation2 + $0x18] sm:$0xff] %v764_v14 }
  0x28   : > { %769 = vst [vmem:[#allocation2 + $0x8] sm:$0xff] %v765_v15 }
  0x29 PF: > { %p3578_p5 = scmp.ge.s32.totalorder %s4282_s19, 2 }
  0x2a   : > { %s4189_s13 = smov (!%p3578_p5), 96   ;;  %s4190_s24 = smov (!%p3578_p5), 64  }
  0x2b   : > { %773 = sbr.rel (%p3578_p5) target bundleno = 4118 (0x1016), region = 88  ;;  %s4191_s27 = smov (!%p3578_p5), 32  }
  0x2c   : > { %s5065_s28 = scalar_lea.vmem (!%p3578_p5), %s5045_s7, %s5072_s20 }
  0x30   : > { %v774_v16 = vld [vmem:[#allocation2 + $0x10] sm:$0xff]  ;;  %v776_v17 = vld [vmem:[#allocation2 + $0x18] sm:$0xff]  ;;  %v775_v18 = vld [vmem:[#allocation2] sm:$0xff]  ;;  %vm1087_vm0 = vcmask 261120   ;;  %vm1262_vm1 = vcmask 130048   ;;  %vm2725_vm2 = vcmask 523264  }
  0x31   : > { %779 = vadd.xlane.f32.xlu0 %v774_v16  ;;  %783 = vadd.xlane.f32.xlu1 %v776_v17  ;;  %v777_v19 = vld [vmem:[#allocation2 + $0x8] sm:$0xff]  ;;  %v886_v20 = vld [vmem:[%s4301_s29 + $0x170] sm:$0xff]  ;;  %v883_v22 = vld [vmem:[%s4301_s29 + $0x158] sm:$0xff]  ;;  %vm2730_vm3 = vcmask 785408  }
  0x32   : > { %v885_v21 = vld [vmem:[%s4301_s29 + $0x168] sm:$0xff]  ;;  %905 = vmatprep.subr.mxu0 %v886_v20  ;;  %v882_v23 = vld [vmem:[%s4301_s29 + $0x150] sm:$0xff]  ;;  %v887_v24 = vld [vmem:[%s4301_s29 + $0x178] sm:$0xff] }
  0x33   : > { %906 = vmatpush1.msra.mxu0 %v885_v21  ;;  %v880_v25 = vld [vmem:[%s4301_s29 + $0x140] sm:$0xff]  ;;  %3785 = vmatprep.subr.mxu1 %v887_v24  ;;  %v879_v27 = vld [vmem:[%s4301_s29 + $0x138] sm:$0xff]  ;;  %v877_v28 = vld [vmem:[%s4301_s29 + $0x128] sm:$0xff] }
  0x34   : > { %v884_v26 = vld [vmem:[%s4301_s29 + $0x160] sm:$0xff]  ;;  %907 = vmatprep.subr.mxu0 %v883_v22  ;;  %3786 = vmatpush3.msra.mxu1 %v887_v24  ;;  %v874_v46 = vld [vmem:[%s4301_s29 + $0x110] sm:$0xff]  ;;  %v881_v47 = vld [vmem:[%s4301_s29 + $0x148] sm:$0xff] }
  0x35   : > { %781 = vadd.xlane.f32.xlu0 %v775_v18  ;;  %785 = vadd.xlane.f32.xlu1 %v777_v19  ;;  %v876_v29 = vld [vmem:[%s4301_s29 + $0x120] sm:$0xff]  ;;  %v873_v48 = vld [vmem:[%s4301_s29 + $0x108] sm:$0xff]  ;;  %v871_v49 = vld [vmem:[%s4301_s29 + $0xf8] sm:$0xff] }
  0x36   : > { %908 = vmatpush1.msra.mxu0 %v882_v23  ;;  %3787 = vmatprep.subr.mxu1 %v884_v26  ;;  %v878_v50 = vld [vmem:[%s4301_s29 + $0x130] sm:$0xff]  ;;  %v868_v52 = vld [vmem:[%s4301_s29 + $0xe0] sm:$0xff]  ;;  %v875_v53 = vld [vmem:[%s4301_s29 + $0x118] sm:$0xff] }
  0x37   : > { %909 = vmatprep.subr.mxu0 %v880_v25  ;;  %3788 = vmatpush3.msra.mxu1 %v884_v26  ;;  %v870_v51 = vld [vmem:[%s4301_s29 + $0xf0] sm:$0xff]  ;;  %v867_v54 = vld [vmem:[%s4301_s29 + $0xd8] sm:$0xff]  ;;  %v865_v55 = vld [vmem:[%s4301_s29 + $0xc8] sm:$0xff] }
  0x38   : > { %910 = vmatpush1.msra.mxu0 %v879_v27  ;;  %3789 = vmatprep.subr.mxu1 %v881_v47  ;;  %v872_v56 = vld [vmem:[%s4301_s29 + $0x100] sm:$0xff]  ;;  %v862_v58 = vld [vmem:[%s4301_s29 + $0xb0] sm:$0xff]  ;;  %v869_v59 = vld [vmem:[%s4301_s29 + $0xe8] sm:$0xff] }
  0x39   : > { %911 = vmatprep.subr.mxu0 %v877_v28  ;;  %3790 = vmatpush3.msra.mxu1 %v881_v47  ;;  %v864_v57 = vld [vmem:[%s4301_s29 + $0xc0] sm:$0xff]  ;;  %v861_v60 = vld [vmem:[%s4301_s29 + $0xa8] sm:$0xff]  ;;  %v859_v61 = vld [vmem:[%s4301_s29 + $0x98] sm:$0xff]  ;;  %v824_v28 = vlaneseq }
  0x3a   : > { %912 = vmatpush1.msra.mxu0 %v876_v29  ;;  %3791 = vmatprep.subr.mxu1 %v878_v50  ;;  %v866_v62 = vld [vmem:[%s4301_s29 + $0xd0] sm:$0xff]  ;;  %v856_v0 = vld [vmem:[%s4301_s29 + $0x80] sm:$0xff]  ;;  %v863_v1 = vld [vmem:[%s4301_s29 + $0xb8] sm:$0xff] }
  0x3b   : > { %913 = vmatprep.subr.mxu0 %v874_v46  ;;  %3792 = vmatpush3.msra.mxu1 %v878_v50  ;;  %v858_v63 = vld [vmem:[%s4301_s29 + $0x90] sm:$0xff]  ;;  %v855_v2 = vld [vmem:[%s4301_s29 + $0x78] sm:$0xff]  ;;  %v853_v3 = vld [vmem:[%s4301_s29 + $0x68] sm:$0xff] }
  0x3c   : > { %914 = vmatpush1.msra.mxu0 %v873_v48  ;;  %3793 = vmatprep.subr.mxu1 %v875_v53  ;;  %v860_v4 = vld [vmem:[%s4301_s29 + $0xa0] sm:$0xff]  ;;  %v850_v6 = vld [vmem:[%s4301_s29 + $0x50] sm:$0xff]  ;;  %v857_v7 = vld [vmem:[%s4301_s29 + $0x88] sm:$0xff] }
  0x3d   : > { %915 = vmatprep.subr.mxu0 %v871_v49  ;;  %3794 = vmatpush3.msra.mxu1 %v875_v53  ;;  %v852_v5 = vld [vmem:[%s4301_s29 + $0x60] sm:$0xff]  ;;  %v849_v8 = vld [vmem:[%s4301_s29 + $0x48] sm:$0xff]  ;;  %v847_v9 = vld [vmem:[%s4301_s29 + $0x38] sm:$0xff] }
  0x3e   : > { %916 = vmatpush1.msra.mxu0 %v870_v51  ;;  %3795 = vmatprep.subr.mxu1 %v872_v56  ;;  %v854_v10 = vld [vmem:[%s4301_s29 + $0x70] sm:$0xff]  ;;  %v844_v12 = vld [vmem:[%s4301_s29 + $0x20] sm:$0xff]  ;;  %v851_v13 = vld [vmem:[%s4301_s29 + $0x58] sm:$0xff] }
  0x3f   : > { %917 = vmatprep.subr.mxu0 %v868_v52  ;;  %3796 = vmatpush3.msra.mxu1 %v872_v56  ;;  %v846_v11 = vld [vmem:[%s4301_s29 + $0x30] sm:$0xff]  ;;  %v843_v14 = vld [vmem:[%s4301_s29 + $0x18] sm:$0xff]  ;;  %v841_v15 = vld [vmem:[%s4301_s29 + $0x8] sm:$0xff] }
  0x40   : > { %918 = vmatpush1.msra.mxu0 %v867_v54  ;;  %3797 = vmatprep.subr.mxu1 %v869_v59  ;;  %v842_v20 = vld [vmem:[%s4301_s29 + $0x10] sm:$0xff] }
  0x41   : > { %919 = vmatprep.subr.mxu0 %v865_v55  ;;  %3798 = vmatpush3.msra.mxu1 %v869_v59 }
  0x42   : > { %920 = vmatpush1.msra.mxu0 %v864_v57  ;;  %3799 = vmatprep.subr.mxu1 %v866_v62 }
  0x43   : > { %921 = vmatprep.subr.mxu0 %v862_v58  ;;  %3800 = vmatpush3.msra.mxu1 %v866_v62 }
  0x44   : > { %922 = vmatpush1.msra.mxu0 %v861_v60  ;;  %3801 = vmatprep.subr.mxu1 %v863_v1 }
  0x45   : > { %923 = vmatprep.subr.mxu0 %v859_v61  ;;  %3802 = vmatpush3.msra.mxu1 %v863_v1 }
  0x46   : > { %924 = vmatpush1.msra.mxu0 %v858_v63  ;;  %3803 = vmatprep.subr.mxu1 %v860_v4 }
  0x47   : > { %925 = vmatprep.subr.mxu0 %v856_v0  ;;  %3804 = vmatpush3.msra.mxu1 %v860_v4 }
  0x48   : > { %926 = vmatpush1.msra.mxu0 %v855_v2  ;;  %3805 = vmatprep.subr.mxu1 %v857_v7 }
  0x49   : > { %927 = vmatprep.subr.mxu0 %v853_v3  ;;  %3806 = vmatpush3.msra.mxu1 %v857_v7 }
  0x4a   : > { %928 = vmatpush1.msra.mxu0 %v852_v5  ;;  %3807 = vmatprep.subr.mxu1 %v854_v10 }
  0x4b   : > { %929 = vmatprep.subr.mxu0 %v850_v6  ;;  %3808 = vmatpush3.msra.mxu1 %v854_v10 }
  0x4c   : > { %930 = vmatpush1.msra.mxu0 %v849_v8  ;;  %3809 = vmatprep.subr.mxu1 %v851_v13 }
  0x4d   : > { %931 = vmatprep.subr.mxu0 %v847_v9  ;;  %3810 = vmatpush3.msra.mxu1 %v851_v13 }
  0x4e   : > { %932 = vmatpush1.msra.mxu0 %v846_v11 }
  0x4f   : > { %933 = vmatprep.subr.mxu0 %v844_v12 }
  0x50   : > { %934 = vmatpush1.msra.mxu0 %v843_v14 }
  0x51   : > { %935 = vmatprep.subr.mxu0 %v841_v15 }
  0xba   : > { %v780_v30 = vpop.xlane.xlu0 %779  ;;  %v784_v31 = vpop.xlane.xlu1 %783 }
  0xbb   : > { %v788_v32 = vmul.f32 0.0078125, %v780_v30  ;;  %v790_v33 = vmul.f32 0.0078125, %v784_v31 }
  0xbd   : > { %v4375_v34 = vsub.f32 %v774_v16, %v788_v32  ;;  %v4377_v35 = vsub.f32 %v776_v17, %v790_v33  ;;  %v848_v16 = vld [vmem:[%s4301_s29 + $0x40] sm:$0xff]  ;;  %v4430_v33 = vshrl.u32 %v824_v28, 7 }
  0xbe   : > { %v782_v36 = vpop.xlane.xlu0 %781  ;;  %v786_v37 = vpop.xlane.xlu1 %785  ;;  %v840_v17 = vld [vmem:[%s4301_s29] sm:$0xff]  ;;  %3811 = vmatprep.subr.mxu1 %v848_v16 }
  0xbf   : > { %v789_v38 = vmul.f32 0.0078125, %v782_v36  ;;  %v796_v39 = vmul.f32 %v4375_v34, %v4375_v34  ;;  %v791_v40 = vmul.f32 0.0078125, %v786_v37  ;;  %v798_v43 = vmul.f32 %v4377_v35, %v4377_v35  ;;  %936 = vmatpush1.msra.mxu0 %v840_v17  ;;  %3812 = vmatpush3.msra.mxu1 %v848_v16 }
  0xc0   : > { %v4433_v37 = vsub.s32 0, %v4430_v33  ;;  %v900_v8 = vsub.s32 2, %v4430_v33 }
  0xc1   : > { %v4381_v41 = vsub.f32 %v775_v18, %v789_v38  ;;  %800 = vadd.xlane.f32.xlu0 %v796_v39  ;;  %v4383_v42 = vsub.f32 %v777_v19, %v791_v40  ;;  %v4188_v18 = vmov 0.0   ;;  %v845_v19 = vld [vmem:[%s4301_s29 + $0x28] sm:$0xff]  ;;  %v778_v38 = vld [vmem:[%s4295_s25] sm:$0xf]  ;;  %v4437_v39 = vsub.s32 1, %v4430_v33 }
  0xc2   : > { %969 = vmatprep.mubr.f32.mxu0 %v4188_v18  ;;  %3813 = vmatprep.subr.mxu1 %v845_v19  ;;  %v827_v40 = vrot.slane %v778_v38, %v4433_v37 }
  0xc3   : > { %v797_v44 = vmul.f32 %v4381_v41, %v4381_v41  ;;  %v799_v45 = vmul.f32 %v4383_v42, %v4383_v42  ;;  %3814 = vmatpush3.msra.mxu1 %v845_v19 }
  0xc4   : > { %3815 = vmatprep.subr.mxu1 %v842_v20 }
  0xc5   : > { %804 = vadd.xlane.f32.xlu0 %v798_v43  ;;  %802 = vadd.xlane.f32.xlu1 %v797_v44 }
  0xc6   : > { %3816 = vmatpush3.msra.mxu1 %v842_v20 }
  0xc9   : > { %806 = vadd.xlane.f32.xlu1 %v799_v45  ;;  %v835_v45 = vrot.slane %v778_v38, %v4437_v39 }
 0x14a   : > { %v801_v21 = vpop.xlane.xlu0 %800 }
 0x14b   : > { %v808_v22 = vmul.f32 0.0078125, %v801_v21 }
 0x14d   : > { %v812_v23 = vadd.f32 1e-06, %v808_v22 }
 0x14e   : > { %v803_v24 = vpop.xlane.xlu1 %802  ;;  %v805_v25 = vpop.xlane.xlu0 %804 }
 0x14f   : > { %4059 = vrsqrt.f32 %v812_v23  ;;  %v809_v26 = vmul.f32 0.0078125, %v803_v24  ;;  %v810_v27 = vmul.f32 0.0078125, %v805_v25  ;;  %v4515_v25 = vld [vmem:[%s5040_s2 + $0x8] sm:$0xff] }
 0x151   : > { %v813_v29 = vadd.f32 1e-06, %v809_v26  ;;  %v814_v30 = vadd.f32 1e-06, %v810_v27  ;;  %v4520_v27 = vld [vmem:[%s5040_s2] sm:$0xff] }
 0x152   : > { %v807_v31 = vpop.xlane.xlu1 %806 }
 0x153   : > { %4061 = vrsqrt.f32 %v813_v29  ;;  %v811_v32 = vmul.f32 0.0078125, %v807_v31 }
 0x154   : > { %4063 = vrsqrt.f32 %v814_v30 }
 0x155   : > { %v815_v36 = vadd.f32 1e-06, %v811_v32 }
 0x157   : > { %4065 = vrsqrt.f32 %v815_v36  ;;  %v4529_v36 = vld [vmem:[%s5040_s2 + $0x18] sm:$0xff] }
 0x15c   : > { %v4060_v43 = vpop.eup %4059 }
 0x15d   : > { %v820_v44 = vmul.f32 %v4060_v43, %v4375_v34 }
 0x15f   : > { %v828_v46 = vmul.f32 %v827_v40, %v820_v44 }
 0x160   : > { %v4062_v47 = vpop.eup %4061 }
 0x161   : > { %v4064_v48 = vpop.eup %4063  ;;  %v836_v49 = vadd.f32 %v835_v45, %v828_v46  ;;  %v821_v50 = vmul.f32 %v4062_v47, %v4381_v41 }
 0x162   : > { %v822_v51 = vmul.f32 %v4064_v48, %v4377_v35  ;;  %v888_v35 = vld [vmem:[%s4307_s18] sm:$0x7] }
 0x163   : > { %970 = vmatmul.mubr.f32.vlgmr.msra.gmra.mxu0 %v836_v49  ;;  %3817 = vmatprep.mubr.f32.mxu1 %v836_v49  ;;  %v829_v52 = vmul.f32 %v827_v40, %v821_v50  ;;  %v893_v58 = vrot.slane %v888_v35, %v4433_v37  ;;  %v897_v63 = vrot.slane %v888_v35, %v4437_v39 }
 0x164   : > { %v4066_v53 = vpop.eup %4065  ;;  %975 = vmatprep.mubr.f32.mxu0 %v4188_v18  ;;  %v830_v54 = vmul.f32 %v827_v40, %v822_v51  ;;  %v4476_v14 = vrot.slane %v888_v35, %v900_v8 }
 0x165   : > { %v837_v55 = vadd.f32 %v835_v45, %v829_v52  ;;  %v823_v34 = vmul.f32 %v4066_v53, %v4383_v42 }
 0x166   : > { %v838_v56 = vadd.f32 %v835_v45, %v830_v54 }
 0x167   : > { %976 = vmatmul.mubr.f32.gmra.mxu0 %v837_v55  ;;  %3818 = vmatmul.mubr.f32.vlgmr.msra.gmra.mxu1 %v837_v55  ;;  %v831_v57 = vmul.f32 %v827_v40, %v823_v34  ;;  %v4534_v40 = vld [vmem:[%s5040_s2 + $0x10] sm:$0xff] }
 0x168   : > { %3820 = vmatprep.mubr.f32.mxu1 %v838_v56  ;;  %981 = vmatprep.mubr.f32.mxu0 %v4188_v18 }
 0x169   : > { %v839_v41 = vadd.f32 %v835_v45, %v831_v57 }
 0x16b   : > { %982 = vmatmul.mubr.f32.gmra.mxu0 %v838_v56  ;;  %3821 = vmatmul.mubr.f32.gmra.mxu1 %v839_v41 }
 0x16c   : > { %987 = vmatprep.mubr.f32.mxu0 %v4188_v18 }
 0x16f   : > { %988 = vmatmul.mubr.f32.gmra.mxu0 %v839_v41 }
 0x223   : > { %v971_v59 = vpop.f32.mrf.mxu0 }
 0x224   : > { %v972_v60 = vadd.f32 %v971_v59, %v893_v58 }
 0x225   : > { %v973_v61 = vpop.f32.mrf.mxu0 }
 0x226   : > { %v4450_v42 = vmul.f32 0.17677669, %v972_v60  ;;  %v4457_v3 = vadd.f32 %v973_v61, %v897_v63 }
 0x227   : > { %v977_v62 = vpop.f32.mrf.mxu0  ;;  %v3819_v12 = vpop.f32.mrf.mxu1 }
 0x228   : > { %3827 = vmatprep.mubr.msk.f32.mxu1 %vm1087_vm0, %v4450_v42  ;;  %v978_v5 = vadd.f32 %v977_v62, %v893_v58  ;;  %v4491_v19 = vadd.f32 %v3819_v12, %v4476_v14 }
 0x229   : > { %v979_v0 = vpop.f32.mrf.mxu0  ;;  %v1060_v17 = vpop.f32.mrf.mxu1 }
 0x22a   : > { %v4455_v1 = vadd.f32 %v979_v0, %v897_v63  ;;  %v4468_v10 = vmul.f32 0.17677669, %v978_v5  ;;  %v4499_v22 = vadd.f32 %v1060_v17, %v4476_v14 }
 0x22b   : > { %v983_v2 = vpop.f32.mrf.mxu0  ;;  %v3822_v21 = vpop.f32.mrf.mxu1 }
 0x22c   : > { %3823 = vmatprep.subr.msk.mxu1 %vm1087_vm0, %v4455_v1  ;;  %v984_v6 = vadd.f32 %v983_v2, %v893_v58  ;;  %v4505_v23 = vadd.f32 %v3822_v21, %v4476_v14 }
 0x22d   : > { %v985_v4 = vpop.f32.mrf.mxu0  ;;  %3824 = vmatpush3.xpose.msk.msra.mxu1 %vm1087_vm0, %v4455_v1  ;;  %v4510_v24 = vpop.f32.mrf.mxu1 }
 0x22e   : > { %3825 = vmatprep.subr.msk.mxu1 %vm1087_vm0, %v4457_v3  ;;  %v4472_v13 = vmul.f32 0.17677669, %v984_v6  ;;  %v4478_v15 = vadd.f32 %v985_v4, %v897_v63  ;;  %v4555_v17 = vadd.f32 %v4510_v24, %v4476_v14 }
 0x22f   : > { %v989_v7 = vpop.f32.mrf.mxu0 }
 0x230   : > { %v990_v16 = vadd.f32 %v989_v7, %v893_v58 }
 0x231   : > { %v991_v9 = vpop.f32.mrf.mxu0  ;;  %3826 = vmatpush3.xpose.msk.msra.mxu1 %vm1087_vm0, %v4457_v3 }
 0x232   : > { %v4470_v11 = vadd.f32 %v991_v9, %v897_v63  ;;  %v4495_v20 = vmul.f32 0.17677669, %v990_v16 }
 0x234   : > { %3828 = vmatmul.mubr.msk.f32.vlgmr.msra.gmra.mxu1 %vm1087_vm0, %v4468_v10  ;;  %3830 = vmatprep.subr.msk.mxu1 %vm1087_vm0, %v4470_v11 }
 0x235   : > { %3831 = vmatpush3.xpose.msk.msra.mxu1 %vm1087_vm0, %v4470_v11  ;;  %3834 = vmatprep.mubr.msk.f32.mxu1 %vm1087_vm0, %v4472_v13 }
 0x236   : > { %3832 = vmatprep.subr.msk.mxu1 %vm1087_vm0, %v4478_v15 }
 0x239   : > { %3833 = vmatpush3.xpose.msk.msra.mxu1 %vm1087_vm0, %v4478_v15 }
 0x23a   : > { %3837 = vmatprep.subr.mxu1 %v4491_v19 }
 0x23c   : > { %3835 = vmatmul.mubr.msk.f32.vlgmr.msra.gmra.mxu1 %vm1087_vm0, %v4495_v20 }
 0x23d   : > { %3838 = vmatpush3.msra.mxu1 %v4491_v19 }
 0x23e   : > { %3839 = vmatprep.subr.mxu1 %v4499_v22 }
 0x23f   : > { %3840 = vmatpush3.msra.mxu1 %v4499_v22 }
 0x240   : > { %3844 = vmatprep.subr.mxu1 %v4505_v23 }
 0x2f4   : > { %v3829_v26 = vpop.f32.mrf.mxu1 }
 0x2f5   : > { %v1172_v28 = vadd.f32 %v3829_v26, %v4515_v25 }
 0x2f6   : > { %v1166_v29 = vpop.f32.mrf.mxu1 }
 0x2f7   : > { %v1167_v30 = vadd.f32 %v1166_v29, %v4520_v27  ;;  %v1266_v31 = vsel %vm1262_vm1, %v1172_v28, -inf }
 0x2f8   : > { %1267 = vmax.xlane.f32.xlu1 %v1266_v31 }
 0x2f9   : > { %v1263_v32 = vsel %vm1262_vm1, %v1167_v30, -inf }
 0x2fa   : > { %1264 = vmax.xlane.f32.xlu0 %v1263_v32 }
 0x2fc   : > { %v3836_v38 = vpop.f32.mrf.mxu1 }
 0x2fd   : > { %v1259_v43 = vadd.f32 %v3836_v38, %v4529_v36 }
 0x2fe   : > { %v1253_v44 = vpop.f32.mrf.mxu1 }
 0x2ff   : > { %v1254_v45 = vadd.f32 %v1253_v44, %v4534_v40  ;;  %v1272_v46 = vsel %vm1262_vm1, %v1259_v43, -inf }
 0x300   : > { %1273 = vmax.xlane.f32.xlu1 %v1272_v46 }
 0x301   : > { %v1269_v47 = vsel %vm1262_vm1, %v1254_v45, -inf }
 0x302   : > { %1270 = vmax.xlane.f32.xlu0 %v1269_v47 }
 0x381   : > { %v1268_v48 = vpop.xlane.xlu1 %1267 }
 0x382   : > { %v1276_v49 = vsub.f32 %v1172_v28, %v1268_v48 }
 0x383   : > { %v1265_v50 = vpop.xlane.xlu0 %1264 }
 0x384   : > { %v1281_v51 = vmul.f32 1.442695, %v1276_v49  ;;  %v1275_v52 = vsub.f32 %v1167_v30, %v1265_v50 }
 0x386   : > { %4067 = vpow2.f32 %v1281_v51  ;;  %v1279_v53 = vmul.f32 1.442695, %v1275_v52 }
 0x388   : > { %4069 = vpow2.f32 %v1279_v53 }
 0x389   : > { %v1274_v54 = vpop.xlane.xlu1 %1273 }
 0x38a   : > { %v1278_v55 = vsub.f32 %v1259_v43, %v1274_v54 }
 0x38b   : > { %v1271_v34 = vpop.xlane.xlu0 %1270 }
 0x38c   : > { %v1285_v56 = vmul.f32 1.442695, %v1278_v55  ;;  %v1277_v57 = vsub.f32 %v1254_v45, %v1271_v34 }
 0x38e   : > { %4071 = vpow2.f32 %v1285_v56  ;;  %v1283_v41 = vmul.f32 1.442695, %v1277_v57 }
 0x390   : > { %4073 = vpow2.f32 %v1283_v41 }
 0x393   : > { %v4068_v35 = vpop.eup %4067 }
 0x394   : > { %v1290_v58 = vsel %vm1262_vm1, %v4068_v35, 0.0 }
 0x395   : > { %v4070_v59 = vpop.eup %4069  ;;  %1291 = vadd.xlane.f32.xlu1 %v1290_v58 }
 0x396   : > { %v1287_v60 = vsel %vm1262_vm1, %v4070_v59, 0.0 }
 0x397   : > { %1288 = vadd.xlane.f32.xlu0 %v1287_v60 }
 0x39b   : > { %v4072_v61 = vpop.eup %4071 }
 0x39c   : > { %v1296_v62 = vsel %vm1262_vm1, %v4072_v61, 0.0 }
 0x39d   : > { %v4074_v63 = vpop.eup %4073  ;;  %1297 = vadd.xlane.f32.xlu1 %v1296_v62 }
 0x39e   : > { %v1293_v0 = vsel %vm1262_vm1, %v4074_v63, 0.0 }
 0x39f   : > { %1294 = vadd.xlane.f32.xlu0 %v1293_v0 }
 0x3ae   : > { %1564 = vrot.lane.b32.xlu1 %v4478_v15, %s4189_s13 }
 0x3b2   : > { %1560 = vrot.lane.b32.xlu1 %v4472_v13, %s4189_s13 }
 0x3b5   : > { %1566 = vrot.lane.b32.xlu0 %v4470_v11, %s4189_s13 }
 0x3b6   : > { %1562 = vrot.lane.b32.xlu1 %v4495_v20, %s4189_s13 }
 0x41e   : > { %v1292_v2 = vpop.xlane.xlu1 %1291 }
 0x41f   : > { %4075 = vrcp.f32 %v1292_v2 }
 0x420   : > { %v1289_v4 = vpop.xlane.xlu0 %1288 }
 0x421   : > { %4077 = vrcp.f32 %v1289_v4 }
 0x426   : > { %v1298_v5 = vpop.xlane.xlu1 %1297 }
 0x427   : > { %4079 = vrcp.f32 %v1298_v5 }
 0x428   : > { %v1295_v6 = vpop.xlane.xlu0 %1294 }
 0x429   : > { %4081 = vrcp.f32 %v1295_v6 }
 0x42a   : > { %v1565_v21 = vpop.permute.xlu1 %1564 }
 0x42c   : > { %v4076_v7 = vpop.eup %4075  ;;  %v1567_v28 = vpop.permute.xlu0 %1566 }
 0x42d   : > { %v1304_v16 = vmul.f32 %v4076_v7, %v4068_v35 }
 0x42e   : > { %v4078_v9 = vpop.eup %4077  ;;  %v1561_v14 = vpop.permute.xlu1 %1560 }
 0x42f   : > { %v1303_v12 = vmul.f32 %v4078_v9, %v4070_v59 }
 0x431   : > { %3841 = vmatprep.mubr.msk.f32.mxu1 %vm1262_vm1, %v1303_v12 }
 0x432   : > { %3842 = vmatmul.mubr.msk.f32.vlgmr.msra.gmra.mxu1 %vm1262_vm1, %v1304_v16  ;;  %v1563_v24 = vpop.permute.xlu1 %1562 }
 0x433   : > { %3845 = vmatpush3.msra.mxu1 %v4505_v23 }
 0x434   : > { %3846 = vmatprep.subr.mxu1 %v4555_v17  ;;  %v4080_v26 = vpop.eup %4079 }
 0x435   : > { %3847 = vmatpush3.msra.mxu1 %v4555_v17  ;;  %v1306_v31 = vmul.f32 %v4080_v26, %v4072_v61 }
 0x436   : > { %v4082_v29 = vpop.eup %4081  ;;  %3858 = vmatprep.subr.msk.mxu1 %vm1087_vm0, %v1567_v28 }
 0x437   : > { %v1305_v30 = vmul.f32 %v4082_v29, %v4074_v63 }
 0x439   : > { %3848 = vmatprep.mubr.msk.f32.mxu1 %vm1262_vm1, %v1305_v30 }
 0x43a   : > { %3849 = vmatmul.mubr.msk.f32.vlgmr.msra.gmra.mxu1 %vm1262_vm1, %v1306_v31 }
 0x43b   : > { %3859 = vmatpush3.xpose.msk.msra.mxu1 %vm1087_vm0, %v1567_v28  ;;  %3862 = vmatprep.mubr.msk.f32.mxu1 %vm1087_vm0, %v1561_v14 }
 0x43c   : > { %3860 = vmatprep.subr.msk.mxu1 %vm1087_vm0, %v1565_v21 }
 0x43f   : > { %3861 = vmatpush3.xpose.msk.msra.mxu1 %vm1087_vm0, %v1565_v21 }
 0x442   : > { %3863 = vmatmul.mubr.msk.f32.vlgmr.msra.gmra.mxu1 %vm1087_vm0, %v1563_v24 }
 0x4f2   : > { %v4569_v32 = vpop.f32.mrf.mxu1 }
 0x4f4   : > { %v4571_v38 = vpop.f32.mrf.mxu1 }
 0x4fa   : > { %v4573_v43 = vpop.f32.mrf.mxu1 }
 0x4fc   : > { %v4575_v44 = vpop.f32.mrf.mxu1 }
 0x502   : > { %v3864_v45 = vpop.f32.mrf.mxu1 }
 0x503   : > { %v1648_v46 = vadd.f32 %v3864_v45, %v4529_v36 }
 0x504   : > { %v1642_v47 = vpop.f32.mrf.mxu1 }
 0x505   : > { %v1643_v48 = vadd.f32 %v1642_v47, %v4534_v40  ;;  %v1660_v49 = vsel %vm1262_vm1, %v1648_v46, -inf }
 0x506   : > { %1661 = vmax.xlane.f32.xlu1 %v1660_v49 }
 0x507   : > { %v1657_v50 = vsel %vm1262_vm1, %v1643_v48, -inf }
 0x508   : > { %1658 = vmax.xlane.f32.xlu0 %v1657_v50 }
 0x517   : > { %1788 = vrot.lane.b32.xlu1 %v4505_v23, %s4189_s13 }
 0x51b   : > { %1786 = vrot.lane.b32.xlu1 %v4555_v17, %s4189_s13 }
 0x51e   : > { %1475 = vrot.lane.b32.xlu0 %v4455_v1, %s4189_s13 }
 0x51f   : > { %1473 = vrot.lane.b32.xlu1 %v4457_v3, %s4189_s13 }
 0x522   : > { %1879 = vrot.lane.b32.xlu0 %v4455_v1, %s4190_s24 }
 0x523   : > { %1469 = vrot.lane.b32.xlu1 %v4450_v42, %s4189_s13 }
 0x527   : > { %1877 = vrot.lane.b32.xlu1 %v4457_v3, %s4190_s24 }
 0x52b   : > { %1875 = vrot.lane.b32.xlu1 %v4468_v10, %s4190_s24 }
 0x52f   : > { %1968 = vrot.lane.b32.xlu1 %v4478_v15, %s4190_s24 }
 0x533   : > { %1966 = vrot.lane.b32.xlu1 %v4495_v20, %s4190_s24 }
 0x58f   : > { %v1662_v51 = vpop.xlane.xlu1 %1661 }
 0x590   : > { %v1666_v52 = vsub.f32 %v1648_v46, %v1662_v51 }
 0x591   : > { %v1659_v53 = vpop.xlane.xlu0 %1658 }
 0x592   : > { %v1673_v54 = vmul.f32 1.442695, %v1666_v52  ;;  %v1665_v55 = vsub.f32 %v1643_v48, %v1659_v53 }
 0x593   : > { %v1789_v34 = vpop.permute.xlu1 %1788 }
 0x594   : > { %4083 = vpow2.f32 %v1673_v54  ;;  %v1671_v56 = vmul.f32 1.442695, %v1665_v55  ;;  %3872 = vmatprep.subr.mxu1 %v1789_v34 }
 0x595   : > { %3873 = vmatpush3.msra.mxu1 %v1789_v34  ;;  %v1476_v57 = vpop.permute.xlu0 %1475 }
 0x596   : > { %4085 = vpow2.f32 %v1671_v56  ;;  %3851 = vmatprep.subr.msk.mxu0 %vm1087_vm0, %v1476_v57 }
 0x597   : > { %v1787_v41 = vpop.permute.xlu1 %1786  ;;  %3852 = vmatpush3.xpose.msk.msra.mxu0 %vm1087_vm0, %v1476_v57 }
 0x598   : > { %3874 = vmatprep.subr.mxu1 %v1787_v41 }
 0x599   : > { %3875 = vmatpush3.msra.mxu1 %v1787_v41  ;;  %v1880_v35 = vpop.permute.xlu0 %1879 }
 0x59a   : > { %3879 = vmatprep.subr.msk.mxu1 %vm1087_vm0, %v1880_v35 }
 0x59b   : > { %v1474_v58 = vpop.permute.xlu1 %1473 }
 0x59c   : > { %3853 = vmatprep.subr.msk.mxu0 %vm1087_vm0, %v1474_v58 }
 0x59d   : > { %3854 = vmatpush3.xpose.msk.msra.mxu0 %vm1087_vm0, %v1474_v58 }
 0x59f   : > { %v1470_v59 = vpop.permute.xlu1 %1469 }
 0x5a0   : > { %3855 = vmatprep.mubr.msk.f32.mxu0 %vm1087_vm0, %v1470_v59 }
 0x5a1   : > { %v4084_v60 = vpop.eup %4083 }
 0x5a2   : > { %v1684_v61 = vsel %vm1262_vm1, %v4084_v60, 0.0 }
 0x5a3   : > { %v4086_v62 = vpop.eup %4085  ;;  %1685 = vadd.xlane.f32.xlu0 %v1684_v61  ;;  %v1878_v9 = vpop.permute.xlu1 %1877 }
 0x5a4   : > { %v1681_v63 = vsel %vm1262_vm1, %v4086_v62, 0.0 }
 0x5a7   : > { %1682 = vadd.xlane.f32.xlu0 %v1681_v63  ;;  %v1876_v26 = vpop.permute.xlu1 %1875 }
 0x5ab   : > { %v1969_v29 = vpop.permute.xlu1 %1968 }
 0x5af   : > { %v1967_v30 = vpop.permute.xlu1 %1966 }
 0x5bd   : > { %1471 = vrot.lane.b32.xlu0 %v4468_v10, %s4189_s13 }
 0x5c1   : > { %1873 = vrot.lane.b32.xlu0 %v4450_v42, %s4190_s24 }
 0x5c5   : > { %1970 = vrot.lane.b32.xlu0 %v4470_v11, %s4190_s24 }
 0x5c9   : > { %1964 = vrot.lane.b32.xlu0 %v4472_v13, %s4190_s24 }
 0x62c   : > { %v1686_v0 = vpop.xlane.xlu0 %1685 }
 0x62d   : > { %4087 = vrcp.f32 %v1686_v0 }
 0x630   : > { %v1683_v2 = vpop.xlane.xlu0 %1682 }
 0x631   : > { %4089 = vrcp.f32 %v1683_v2 }
 0x634   : > { %v1472_v4 = vpop.permute.xlu0 %1471 }
 0x635   : > { %3856 = vmatmul.mubr.msk.f32.vlgmr.msra.gmra.mxu0 %vm1087_vm0, %v1472_v4 }
 0x638   : > { %v1874_v7 = vpop.permute.xlu0 %1873 }
 0x63a   : > { %v4088_v5 = vpop.eup %4087 }
 0x63b   : > { %v1694_v16 = vmul.f32 %v4088_v5, %v4084_v60 }
 0x63c   : > { %v1971_v21 = vpop.permute.xlu0 %1970 }
 0x63e   : > { %v4090_v6 = vpop.eup %4089 }
 0x63f   : > { %v1693_v12 = vmul.f32 %v4090_v6, %v4086_v62 }
 0x640   : > { %v1965_v28 = vpop.permute.xlu0 %1964 }
 0x641   : > { %3876 = vmatprep.mubr.msk.f32.mxu1 %vm1262_vm1, %v1693_v12 }
 0x642   : > { %3877 = vmatmul.mubr.msk.f32.vlgmr.msra.gmra.mxu1 %vm1262_vm1, %v1694_v16 }
 0x643   : > { %3880 = vmatpush3.xpose.msk.msra.mxu1 %vm1087_vm0, %v1880_v35  ;;  %3883 = vmatprep.mubr.msk.f32.mxu1 %vm1087_vm0, %v1874_v7 }
 0x644   : > { %3881 = vmatprep.subr.msk.mxu1 %vm1087_vm0, %v1878_v9 }
 0x647   : > { %3882 = vmatpush3.xpose.msk.msra.mxu1 %vm1087_vm0, %v1878_v9 }
 0x648   : > { %3886 = vmatprep.subr.msk.mxu1 %vm1087_vm0, %v1971_v21 }
 0x64a   : > { %3884 = vmatmul.mubr.msk.f32.vlgmr.msra.gmra.mxu1 %vm1087_vm0, %v1876_v26 }
 0x64b   : > { %3887 = vmatpush3.xpose.msk.msra.mxu1 %vm1087_vm0, %v1971_v21  ;;  %3890 = vmatprep.mubr.msk.f32.mxu1 %vm1087_vm0, %v1965_v28 }
 0x64c   : > { %3888 = vmatprep.subr.msk.mxu1 %vm1087_vm0, %v1969_v29 }
 0x64f   : > { %3889 = vmatpush3.xpose.msk.msra.mxu1 %vm1087_vm0, %v1969_v29 }
 0x652   : > { %3891 = vmatmul.mubr.msk.f32.vlgmr.msra.gmra.mxu1 %vm1087_vm0, %v1967_v30 }
 0x6f5   : > { %v3857_v31 = vpop.f32.mrf.mxu0 }
 0x6f6   : > { %v1557_v14 = vadd.f32 %v3857_v31, %v4515_v25 }
 0x6f7   : > { %v1551_v24 = vpop.f32.mrf.mxu0 }
 0x6f8   : > { %v1552_v45 = vadd.f32 %v1551_v24, %v4520_v27  ;;  %v1654_v46 = vsel %vm1262_vm1, %v1557_v14, -inf }
 0x6f9   : > { %1655 = vmax.xlane.f32.xlu1 %v1654_v46 }
 0x6fa   : > { %v1651_v47 = vsel %vm1262_vm1, %v1552_v45, -inf }
 0x6fb   : > { %1652 = vmax.xlane.f32.xlu0 %v1651_v47 }
 0x702   : > { %v4635_v48 = vpop.f32.mrf.mxu1 }
 0x704   : > { %v4637_v49 = vpop.f32.mrf.mxu1 }
 0x705   : > { %v4044_v50 = vpack.i.bf16 %v4635_v48, %v4637_v49 }
 0x70a   : > { %v3885_v58 = vpop.f32.mrf.mxu1 }
 0x70b   : > { %v1961_v60 = vadd.f32 %v3885_v58, %v4515_v25 }
 0x70c   : > { %v1955_v59 = vpop.f32.mrf.mxu1 }
 0x70d   : > { %v1956_v62 = vadd.f32 %v1955_v59, %v4520_v27  ;;  %v2058_v63 = vsel %vm1262_vm1, %v1961_v60, -inf }
 0x712   : > { %v3892_v61 = vpop.f32.mrf.mxu1 }
 0x713   : > { %v2052_v2 = vadd.f32 %v3892_v61, %v4529_v36 }
 0x714   : > { %v2046_v0 = vpop.f32.mrf.mxu1 }
 0x715   : > { %v2047_v4 = vadd.f32 %v2046_v0, %v4534_v40  ;;  %v2064_v5 = vsel %vm1262_vm1, %v2052_v2, -inf }
 0x717   : > { %v2061_v6 = vsel %vm1262_vm1, %v2047_v4, -inf }
 0x782   : > { %v1656_v51 = vpop.xlane.xlu1 %1655 }
 0x783   : > { %v1664_v52 = vsub.f32 %v1557_v14, %v1656_v51 }
 0x784   : > { %v1653_v53 = vpop.xlane.xlu0 %1652 }
 0x785   : > { %v1669_v54 = vmul.f32 1.442695, %v1664_v52  ;;  %v1663_v55 = vsub.f32 %v1552_v45, %v1653_v53 }
 0x787   : > { %4091 = vpow2.f32 %v1669_v54  ;;  %v1667_v34 = vmul.f32 1.442695, %v1663_v55 }
 0x789   : > { %4093 = vpow2.f32 %v1667_v34 }
 0x794   : > { %v4092_v56 = vpop.eup %4091 }
 0x795   : > { %v1678_v57 = vsel %vm1262_vm1, %v4092_v56, 0.0 }
 0x796   : > { %v4094_v41 = vpop.eup %4093  ;;  %1679 = vadd.xlane.f32.xlu1 %v1678_v57 }
 0x797   : > { %v1675_v35 = vsel %vm1262_vm1, %v4094_v41, 0.0 }
 0x798   : > { %1676 = vadd.xlane.f32.xlu0 %v1675_v35 }
 0x7a7   : > { %1697 = vrot.lane.b32.xlu1 %v4499_v22, %s4189_s13 }
 0x7ab   : > { %2101 = vrot.lane.b32.xlu1 %v4491_v19, %s4190_s24 }
 0x7ae   : > { %1699 = vrot.lane.b32.xlu0 %v4491_v19, %s4189_s13 }
 0x7af   : > { %2099 = vrot.lane.b32.xlu1 %v4499_v22, %s4190_s24 }
 0x7b2   : > { %2279 = vrot.lane.b32.xlu0 %v4455_v1, %s4191_s27  ;;  %v2055_v1 = vsel %vm1262_vm1, %v1956_v62, -inf }
 0x7b3   : > { %2188 = vrot.lane.b32.xlu1 %v4505_v23, %s4190_s24 }
 0x7d1   : > { %2059 = vmax.xlane.f32.xlu0 %v2058_v63 }
 0x7d5   : > { %2056 = vmax.xlane.f32.xlu0 %v2055_v1 }
 0x7d7   : > { %2065 = vmax.xlane.f32.xlu1 %v2064_v5 }
 0x7d9   : > { %2062 = vmax.xlane.f32.xlu0 %v2061_v6 }
 0x7e8   : > { %2186 = vrot.lane.b32.xlu1 %v4555_v17, %s4190_s24 }
 0x7ef   : > { %2277 = vrot.lane.b32.xlu0 %v4457_v3, %s4191_s27 }
 0x81f   : > { %v1680_v7 = vpop.xlane.xlu1 %1679 }
 0x820   : > { %4095 = vrcp.f32 %v1680_v7 }
 0x821   : > { %v1677_v9 = vpop.xlane.xlu0 %1676 }
 0x822   : > { %4097 = vrcp.f32 %v1677_v9 }
 0x823   : > { %v1698_v12 = vpop.permute.xlu1 %1697 }
 0x825   : > { %v1700_v16 = vpop.permute.xlu0 %1699 }
 0x826   : > { %3865 = vmatprep.subr.mxu0 %v1700_v16 }
 0x827   : > { %v2102_v21 = vpop.permute.xlu1 %2101  ;;  %3866 = vmatpush3.msra.mxu0 %v1700_v16 }
 0x828   : > { %3867 = vmatprep.subr.mxu0 %v1698_v12 }
 0x829   : > { %3868 = vmatpush3.msra.mxu0 %v1698_v12  ;;  %v2280_v14 = vpop.permute.xlu0 %2279 }
 0x82a   : > { %3893 = vmatprep.subr.mxu0 %v2102_v21 }
 0x82b   : > { %v2100_v26 = vpop.permute.xlu1 %2099 }
 0x82d   : > { %v4096_v28 = vpop.eup %4095 }
 0x82e   : > { %v1692_v3 = vmul.f32 %v4096_v28, %v4092_v56 }
 0x82f   : > { %v4098_v29 = vpop.eup %4097  ;;  %v2189_v30 = vpop.permute.xlu1 %2188 }
 0x830   : > { %3900 = vmatprep.subr.mxu1 %v2189_v30  ;;  %v1691_v31 = vmul.f32 %v4098_v29, %v4094_v41 }
 0x831   : > { %3901 = vmatpush3.msra.mxu1 %v2189_v30 }
 0x832   : > { %3869 = vmatprep.mubr.msk.f32.mxu0 %vm1262_vm1, %v1691_v31 }
 0x833   : > { %3870 = vmatmul.mubr.msk.f32.vlgmr.msra.gmra.mxu0 %vm1262_vm1, %v1692_v3 }
 0x834   : > { %3894 = vmatpush3.msra.mxu0 %v2102_v21 }
 0x835   : > { %3895 = vmatprep.subr.mxu0 %v2100_v26 }
 0x836   : > { %3896 = vmatpush3.msra.mxu0 %v2100_v26 }
 0x837   : > { %3907 = vmatprep.subr.msk.mxu0 %vm1087_vm0, %v2280_v14 }
 0x85a   : > { %v2060_v24 = vpop.xlane.xlu0 %2059 }
 0x85b   : > { %v2068_v45 = vsub.f32 %v1961_v60, %v2060_v24 }
 0x85d   : > { %v2073_v46 = vmul.f32 1.442695, %v2068_v45 }
 0x85e   : > { %v2057_v47 = vpop.xlane.xlu0 %2056 }
 0x85f   : > { %4099 = vpow2.f32 %v2073_v46  ;;  %v2067_v51 = vsub.f32 %v1956_v62, %v2057_v47 }
 0x860   : > { %v2066_v52 = vpop.xlane.xlu1 %2065 }
 0x861   : > { %v2071_v53 = vmul.f32 1.442695, %v2067_v51  ;;  %v2070_v41 = vsub.f32 %v2052_v2, %v2066_v52 }
 0x862   : > { %v2063_v35 = vpop.xlane.xlu0 %2062 }
 0x863   : > { %4101 = vpow2.f32 %v2071_v53  ;;  %v2077_v58 = vmul.f32 1.442695, %v2070_v41  ;;  %v2069_v59 = vsub.f32 %v2047_v4, %v2063_v35 }
 0x864   : > { %v2187_v54 = vpop.permute.xlu1 %2186 }
 0x865   : > { %3902 = vmatprep.subr.mxu1 %v2187_v54  ;;  %4103 = vpow2.f32 %v2077_v58  ;;  %v2075_v60 = vmul.f32 1.442695, %v2069_v59 }
 0x866   : > { %3903 = vmatpush3.msra.mxu1 %v2187_v54 }
 0x867   : > { %4105 = vpow2.f32 %v2075_v60 }
 0x86c   : > { %v4100_v55 = vpop.eup %4099 }
 0x86d   : > { %v2082_v34 = vsel %vm1262_vm1, %v4100_v55, 0.0 }
 0x86e   : > { %2083 = vadd.xlane.f32.xlu1 %v2082_v34 }
 0x870   : > { %v4102_v56 = vpop.eup %4101 }
 0x871   : > { %v2079_v57 = vsel %vm1262_vm1, %v4102_v56, 0.0 }
 0x872   : > { %2080 = vadd.xlane.f32.xlu0 %v2079_v57  ;;  %v4104_v61 = vpop.eup %4103 }
 0x873   : > { %v2088_v62 = vsel %vm1262_vm1, %v4104_v61, 0.0 }
 0x874   : > { %v4106_v63 = vpop.eup %4105 }
 0x875   : > { %v2085_v0 = vsel %vm1262_vm1, %v4106_v63, 0.0 }
 0x87f   : > { %2275 = vrot.lane.b32.xlu1 %v4468_v10, %s4191_s27 }
 0x888   : > { %2273 = vrot.lane.b32.xlu0 %v4450_v42, %s4191_s27  ;;  %v2278_v42 = vpop.permute.xlu0 %2277 }
 0x8a3   : > { %2089 = vadd.xlane.f32.xlu1 %v2088_v62 }
 0x8a7   : > { %2086 = vadd.xlane.f32.xlu0 %v2085_v0 }
 0x8b4   : > { %2368 = vrot.lane.b32.xlu1 %v4478_v15, %s4191_s27 }
 0x8b8   : > { %2366 = vrot.lane.b32.xlu1 %v4495_v20, %s4191_s27 }
 0x8bd   : > { %2370 = vrot.lane.b32.xlu0 %v4470_v11, %s4191_s27 }
 0x8c1   : > { %2364 = vrot.lane.b32.xlu0 %v4472_v13, %s4191_s27 }
 0x8f3   : > { %v3871_v30 = vpop.f32.mrf.mxu0 }
 0x8f5   : > { %v1775_v31 = vpop.f32.mrf.mxu0 }
 0x8f7   : > { %v2084_v10 = vpop.xlane.xlu1 %2083 }
 0x8f8   : > { %4107 = vrcp.f32 %v2084_v10 }
 0x8fb   : > { %v2081_v2 = vpop.xlane.xlu0 %2080  ;;  %v2276_v11 = vpop.permute.xlu1 %2275 }
 0x8fc   : > { %4109 = vrcp.f32 %v2081_v2 }
 0x8ff   : > { %v2274_v15 = vpop.permute.xlu0 %2273 }
 0x905   : > { %v4108_v4 = vpop.eup %4107 }
 0x906   : > { %v2096_v6 = vmul.f32 %v4108_v4, %v4100_v55 }
 0x909   : > { %v4110_v1 = vpop.eup %4109 }
 0x90a   : > { %v2095_v5 = vmul.f32 %v4110_v1, %v4102_v56 }
 0x90c   : > { %3897 = vmatprep.mubr.msk.f32.mxu0 %vm1262_vm1, %v2095_v5 }
 0x90d   : > { %3898 = vmatmul.mubr.msk.f32.vlgmr.msra.gmra.mxu0 %vm1262_vm1, %v2096_v6 }
 0x90e   : > { %3908 = vmatpush3.xpose.msk.msra.mxu0 %vm1087_vm0, %v2280_v14  ;;  %3911 = vmatprep.mubr.msk.f32.mxu0 %vm1087_vm0, %v2274_v15 }
 0x90f   : > { %3909 = vmatprep.subr.msk.mxu0 %vm1087_vm0, %v2278_v42 }
 0x912   : > { %3910 = vmatpush3.xpose.msk.msra.mxu0 %vm1087_vm0, %v2278_v42 }
 0x915   : > { %3912 = vmatmul.mubr.msk.f32.vlgmr.msra.gmra.mxu0 %vm1087_vm0, %v2276_v11 }
 0x92c   : > { %v2090_v13 = vpop.xlane.xlu1 %2089 }
 0x92d   : > { %4111 = vrcp.f32 %v2090_v13 }
 0x930   : > { %v2087_v20 = vpop.xlane.xlu0 %2086  ;;  %v2369_v28 = vpop.permute.xlu1 %2368 }
 0x931   : > { %4113 = vrcp.f32 %v2087_v20 }
 0x934   : > { %v2371_v7 = vpop.permute.xlu0 %2370  ;;  %v2367_v29 = vpop.permute.xlu1 %2366 }
 0x935   : > { %3914 = vmatprep.subr.msk.mxu1 %vm1087_vm0, %v2371_v7 }
 0x938   : > { %v2365_v26 = vpop.permute.xlu0 %2364 }
 0x93a   : > { %v4112_v9 = vpop.eup %4111 }
 0x93b   : > { %v2098_v21 = vmul.f32 %v4112_v9, %v4104_v61 }
 0x93e   : > { %v4114_v12 = vpop.eup %4113 }
 0x93f   : > { %v2097_v16 = vmul.f32 %v4114_v12, %v4106_v63 }
 0x941   : > { %3904 = vmatprep.mubr.msk.f32.mxu1 %vm1262_vm1, %v2097_v16 }
 0x942   : > { %3905 = vmatmul.mubr.msk.f32.vlgmr.msra.gmra.mxu1 %vm1262_vm1, %v2098_v21 }
 0x943   : > { %3915 = vmatpush3.xpose.msk.msra.mxu1 %vm1087_vm0, %v2371_v7  ;;  %3918 = vmatprep.mubr.msk.f32.mxu1 %vm1087_vm0, %v2365_v26  ;;  %v4029_v7 = vpack.i.bf16 %v3871_v30, %v1775_v31 }
 0x944   : > { %3916 = vmatprep.subr.msk.mxu1 %vm1087_vm0, %v2369_v28 }
 0x947   : > { %3917 = vmatpush3.xpose.msk.msra.mxu1 %vm1087_vm0, %v2369_v28 }
 0x94a   : > { %3919 = vmatmul.mubr.msk.f32.vlgmr.msra.gmra.mxu1 %vm1087_vm0, %v2367_v29 }
 0x9cd   : > { %v3899_v3 = vpop.f32.mrf.mxu0 }
 0x9cf   : > { %v2177_v14 = vpop.f32.mrf.mxu0 }
 0x9d0   : > { %v4034_v24 = vpack.i.bf16 %v3899_v3, %v2177_v14  ;;  %v2750_v3 = vld [vmem:[%s4312_s12 + $0x78] sm:$0xff]  ;;  %v2749_v14 = vld [vmem:[%s4312_s12 + $0x70] sm:$0xff] }
 0x9d5   : > { %v3913_v45 = vpop.f32.mrf.mxu0 }
 0x9d6   : > { %v2361_v46 = vadd.f32 %v3913_v45, %v4515_v25  ;;  %v2747_v45 = vld [vmem:[%s4312_s12 + $0x60] sm:$0xff] }
 0x9d7   : > { %v2355_v47 = vpop.f32.mrf.mxu0 }
 0x9d8   : > { %v2356_v51 = vadd.f32 %v2355_v47, %v4520_v27  ;;  %v2458_v52 = vsel %vm1262_vm1, %v2361_v46, -inf  ;;  %v2745_v47 = vld [vmem:[%s4312_s12 + $0x50] sm:$0xff] }
 0x9d9   : > { %2459 = vmax.xlane.f32.xlu1 %v2458_v52  ;;  %v2743_v52 = vld [vmem:[%s4312_s12 + $0x40] sm:$0xff] }
 0x9da   : > { %v2455_v53 = vsel %vm1262_vm1, %v2356_v51, -inf }
 0x9db   : > { %2456 = vmax.xlane.f32.xlu0 %v2455_v53  ;;  %v2742_v53 = vld [vmem:[%s4312_s12 + $0x38] sm:$0xff] }
 0xa02   : > { %v4705_v54 = vpop.f32.mrf.mxu1 }
 0xa04   : > { %v4707_v55 = vpop.f32.mrf.mxu1 }
 0xa05   : > { %v4049_v34 = vpack.i.bf16 %v4705_v54, %v4707_v55 }
 0xa0a   : > { %v3920_v56 = vpop.f32.mrf.mxu1 }
 0xa0b   : > { %v2452_v41 = vadd.f32 %v3920_v56, %v4529_v36  ;;  %v2741_v56 = vld [vmem:[%s4312_s12 + $0x30] sm:$0xff] }
 0xa0c   : > { %v2446_v57 = vpop.f32.mrf.mxu1 }
 0xa0d   : > { %v2447_v25 = vadd.f32 %v2446_v57, %v4534_v40  ;;  %v2464_v35 = vsel %vm1262_vm1, %v2452_v41, -inf  ;;  %v2740_v57 = vld [vmem:[%s4312_s12 + $0x28] sm:$0xff] }
 0xa0f   : > { %v2461_v27 = vsel %vm1262_vm1, %v2447_v25, -inf }
 0xa10   : > { %2462 = vmax.xlane.f32.xlu0 %v2461_v27  ;;  %v2737_v27 = vld [vmem:[%s4312_s12 + $0x10] sm:$0xff] }
 0xa14   : > { %2465 = vmax.xlane.f32.xlu0 %v2464_v35  ;;  %v2736_v35 = vld [vmem:[%s4312_s12 + $0x8] sm:$0xff] }
 0xa62   : > { %v2460_v58 = vpop.xlane.xlu1 %2459 }
 0xa63   : > { %v2468_v59 = vsub.f32 %v2361_v46, %v2460_v58  ;;  %v2746_v46 = vld [vmem:[%s4312_s12 + $0x58] sm:$0xff]  ;;  %v2735_v58 = vld [vmem:[%s4312_s12] sm:$0xff] }
 0xa64   : > { %v2457_v60 = vpop.xlane.xlu0 %2456 }
 0xa65   : > { %v2473_v61 = vmul.f32 1.442695, %v2468_v59  ;;  %v2467_v62 = vsub.f32 %v2356_v51, %v2457_v60  ;;  %v2744_v51 = vld [vmem:[%s4312_s12 + $0x48] sm:$0xff] }
 0xa67   : > { %4115 = vpow2.f32 %v2473_v61  ;;  %v2471_v63 = vmul.f32 1.442695, %v2467_v62 }
 0xa69   : > { %4117 = vpow2.f32 %v2471_v63 }
 0xa74   : > { %v4116_v0 = vpop.eup %4115 }
 0xa75   : > { %v2482_v42 = vsel %vm1262_vm1, %v4116_v0, 0.0 }
 0xa76   : > { %v4118_v40 = vpop.eup %4117  ;;  %2483 = vadd.xlane.f32.xlu1 %v2482_v42 }
 0xa77   : > { %v2479_v36 = vsel %vm1262_vm1, %v4118_v40, 0.0 }
 0xa78   : > { %2480 = vadd.xlane.f32.xlu0 %v2479_v36 }
 0xa99   : > { %v2463_v10 = vpop.xlane.xlu0 %2462 }
 0xa9a   : > { %v2469_v2 = vsub.f32 %v2447_v25, %v2463_v10  ;;  %v2739_v25 = vld [vmem:[%s4312_s12 + $0x20] sm:$0xff] }
 0xa9c   : > { %v2475_v4 = vmul.f32 1.442695, %v2469_v2 }
 0xa9d   : > { %v2466_v1 = vpop.xlane.xlu0 %2465 }
 0xa9e   : > { %4119 = vpow2.f32 %v2475_v4  ;;  %v2470_v5 = vsub.f32 %v2452_v41, %v2466_v1  ;;  %v2738_v41 = vld [vmem:[%s4312_s12 + $0x18] sm:$0xff] }
 0xaa0   : > { %v2477_v6 = vmul.f32 1.442695, %v2470_v5 }
 0xaa2   : > { %4121 = vpow2.f32 %v2477_v6 }
 0xaab   : > { %v4120_v15 = vpop.eup %4119 }
 0xaac   : > { %v2485_v11 = vsel %vm1262_vm1, %v4120_v15, 0.0 }
 0xaad   : > { %2486 = vadd.xlane.f32.xlu0 %v2485_v11 }
 0xaaf   : > { %v4122_v13 = vpop.eup %4121 }
 0xab0   : > { %v2488_v20 = vsel %vm1262_vm1, %v4122_v13, 0.0 }
 0xab1   : > { %2489 = vadd.xlane.f32.xlu1 %v2488_v20 }
 0xac2   : > { %2499 = vrot.lane.b32.xlu1 %v4499_v22, %s4191_s27 }
 0xac3   : > { %2501 = vrot.lane.b32.xlu0 %v4491_v19, %s4191_s27 }
 0xac6   : > { %2588 = vrot.lane.b32.xlu1 %v4505_v23, %s4191_s27 }
 0xac7   : > { %4030 = vrot.lane.b32.xlu0 %v4029_v7, %s4191_s27 }
 0xaca   : > { %2586 = vrot.lane.b32.xlu1 %v4555_v17, %s4191_s27 }
 0xace   : > { %4035 = vrot.lane.b32.xlu1 %v4034_v24, %s4190_s24  ;;  %v2748_v24 = vld [vmem:[%s4312_s12 + $0x68] sm:$0xff] }
 0xad2   : > { %4045 = vrot.lane.b32.xlu1 %v4044_v50, %s4191_s27 }
 0xaff   : > { %v2484_v12 = vpop.xlane.xlu1 %2483 }
 0xb01   : > { %v2481_v22 = vpop.xlane.xlu0 %2480 }
 0xb02   : > { %4123 = vrcp.f32 %v2481_v22 }
 0xb03   : > { %4125 = vrcp.f32 %v2484_v12 }
 0xb0f   : > { %v4124_v9 = vpop.eup %4123 }
 0xb10   : > { %v2495_v19 = vmul.f32 %v4124_v9, %v4118_v40  ;;  %v4126_v17 = vpop.eup %4125 }
 0xb11   : > { %v2496_v48 = vmul.f32 %v4126_v17, %v4116_v0 }
 0xb12   : > { %3925 = vmatprep.mubr.msk.f32.mxu0 %vm1262_vm1, %v2495_v19 }
 0xb36   : > { %v2487_v23 = vpop.xlane.xlu0 %2486 }
 0xb37   : > { %4127 = vrcp.f32 %v2487_v23 }
 0xb3a   : > { %v2490_v16 = vpop.xlane.xlu1 %2489  ;;  %v2502_v21 = vpop.permute.xlu0 %2501 }
 0xb3b   : > { %4129 = vrcp.f32 %v2490_v16  ;;  %3921 = vmatprep.subr.mxu0 %v2502_v21 }
 0xb3c   : > { %3922 = vmatpush3.msra.mxu0 %v2502_v21 }
 0xb3e   : > { %v2500_v26 = vpop.permute.xlu1 %2499  ;;  %v4031_v42 = vpop.permute.xlu0 %4030 }
 0xb3f   : > { %3923 = vmatprep.subr.mxu0 %v2500_v26  ;;  %v4033_v36 = vunpack.i.h.bf16 %v4031_v42  ;;  %v4032_v10 = vunpack.i.l.bf16 %v4031_v42 }
 0xb40   : > { %3924 = vmatpush3.msra.mxu0 %v2500_v26 }
 0xb41   : > { %3926 = vmatmul.mubr.msk.f32.vlgmr.msra.gmra.mxu0 %vm1262_vm1, %v2496_v48  ;;  %3935 = vmatprep.subr.mxu0 %v2750_v3  ;;  %v2722_v5 = vsel %vm1087_vm0, %v4569_v32, %v4033_v36  ;;  %v2721_v55 = vsel %vm1087_vm0, %v4571_v38, %v4032_v10 }
 0xb42   : > { %v2589_v49 = vpop.permute.xlu1 %2588  ;;  %3936 = vmatpush3.msra.mxu0 %v2750_v3 }
 0xb43   : > { %3928 = vmatprep.subr.mxu1 %v2589_v49  ;;  %3937 = vmatprep.subr.mxu0 %v2749_v14 }
 0xb44   : > { %v4128_v50 = vpop.eup %4127  ;;  %3929 = vmatpush3.msra.mxu1 %v2589_v49  ;;  %3938 = vmatpush3.msra.mxu0 %v2749_v14 }
 0xb45   : > { %v2497_v28 = vmul.f32 %v4128_v50, %v4120_v15  ;;  %3939 = vmatprep.subr.mxu0 %v2748_v24 }
 0xb46   : > { %v2587_v29 = vpop.permute.xlu1 %2586  ;;  %3940 = vmatpush3.msra.mxu0 %v2748_v24 }
 0xb47   : > { %3930 = vmatprep.subr.mxu1 %v2587_v29  ;;  %3932 = vmatprep.mubr.msk.f32.mxu1 %vm1262_vm1, %v2497_v28  ;;  %v3627_v28 = vld [vmem:[%s5065_s28] ss:$0 sm:$0xff] }
 0xb48   : > { %v4130_v30 = vpop.eup %4129  ;;  %3931 = vmatpush3.msra.mxu1 %v2587_v29  ;;  %3941 = vmatprep.subr.mxu0 %v2747_v45 }
 0xb49   : > { %v2498_v31 = vmul.f32 %v4130_v30, %v4122_v13  ;;  %3942 = vmatpush3.msra.mxu0 %v2747_v45 }
 0xb4a   : > { %3943 = vmatprep.subr.mxu0 %v2746_v46  ;;  %v4036_v40 = vpop.permute.xlu1 %4035 }
 0xb4b   : > { %3933 = vmatmul.mubr.msk.f32.vlgmr.msra.gmra.mxu1 %vm1262_vm1, %v2498_v31  ;;  %3944 = vmatpush3.msra.mxu0 %v2746_v46  ;;  %v4038_v2 = vunpack.i.h.bf16 %v4036_v40  ;;  %v4037_v4 = vunpack.i.l.bf16 %v4036_v40  ;;  %v4140_v31 = vld [vmem:[#allocation2 + $0x10] sm:$0xff]  ;;  %v4141_v46 = vld [vmem:[#allocation2 + $0x18] sm:$0xff] }
 0xb4c   : > { %3019 = vmatprep.mubr.f32.mxu1 %v4188_v18  ;;  %3945 = vmatprep.subr.mxu0 %v2745_v47 }
 0xb4d   : > { %3946 = vmatpush3.msra.mxu0 %v2745_v47  ;;  %v2727_v15 = vsel %vm2725_vm2, %v2722_v5, %v4038_v2 }
 0xb4e   : > { %3947 = vmatprep.subr.mxu0 %v2744_v51  ;;  %v4046_v20 = vpop.permute.xlu1 %4045 }
 0xb4f   : > { %3948 = vmatpush3.msra.mxu0 %v2744_v51  ;;  %v4048_v22 = vunpack.i.h.bf16 %v4046_v20  ;;  %v4047_v32 = vunpack.i.l.bf16 %v4046_v20  ;;  %v4142_v51 = vld [vmem:[#allocation2 + $0x8] sm:$0xff]  ;;  %v2931_v20 = vld [vmem:[%s4322_s22 + $0xa0] sm:$0xff] }
 0xb50   : > { %3949 = vmatprep.subr.mxu0 %v2743_v52 }
 0xb51   : > { %3950 = vmatpush3.msra.mxu0 %v2743_v52  ;;  %v2723_v16 = vsel %vm1087_vm0, %v4575_v44, %v4047_v32  ;;  %v2724_v21 = vsel %vm1087_vm0, %v4573_v43, %v4048_v22  ;;  %v4139_v44 = vld [vmem:[#allocation2] sm:$0xff]  ;;  %v2929_v22 = vld [vmem:[%s4322_s22 + $0x90] sm:$0xff]  ;;  %v2928_v32 = vld [vmem:[%s4322_s22 + $0x88] sm:$0xff] }
 0xb52   : > { %3951 = vmatprep.subr.mxu0 %v2742_v53 }
 0xb53   : > { %3952 = vmatpush3.msra.mxu0 %v2742_v53 }
 0xb54   : > { %3953 = vmatprep.subr.mxu0 %v2741_v56 }
 0xb55   : > { %3954 = vmatpush3.msra.mxu0 %v2741_v56 }
 0xb56   : > { %3955 = vmatprep.subr.mxu0 %v2740_v57 }
 0xb57   : > { %3956 = vmatpush3.msra.mxu0 %v2740_v57  ;;  %v2942_v57 = vld [vmem:[%s4322_s22 + $0xf8] sm:$0xff] }
 0xb58   : > { %3957 = vmatprep.subr.mxu0 %v2739_v25  ;;  %2955 = vmatprep.subr.mxu1 %v2942_v57  ;;  %v3064_v57 = vld [vmem:[%s4333_s15 + $0x60] sm:$0xff] }
 0xb59   : > { %3958 = vmatpush3.msra.mxu0 %v2739_v25  ;;  %v2941_v25 = vld [vmem:[%s4322_s22 + $0xf0] sm:$0xff] }
 0xb5a   : > { %3959 = vmatprep.subr.mxu0 %v2738_v41  ;;  %2956 = vmatpush1.msra.mxu1 %v2941_v25  ;;  %v3079_v25 = vld [vmem:[%s4333_s15 + $0xd8] sm:$0xff] }
 0xb5b   : > { %3960 = vmatpush3.msra.mxu0 %v2738_v41  ;;  %v2940_v41 = vld [vmem:[%s4322_s22 + $0xe8] sm:$0xff] }
 0xb5c   : > { %3961 = vmatprep.subr.mxu0 %v2737_v27  ;;  %2957 = vmatprep.subr.mxu1 %v2940_v41  ;;  %v3063_v41 = vld [vmem:[%s4333_s15 + $0x58] sm:$0xff] }
 0xb5d   : > { %3962 = vmatpush3.msra.mxu0 %v2737_v27  ;;  %v2939_v27 = vld [vmem:[%s4322_s22 + $0xe0] sm:$0xff] }
 0xb5e   : > { %3963 = vmatprep.subr.mxu0 %v2736_v35  ;;  %2958 = vmatpush1.msra.mxu1 %v2939_v27  ;;  %v3078_v27 = vld [vmem:[%s4333_s15 + $0xd0] sm:$0xff] }
 0xb5f   : > { %3964 = vmatpush3.msra.mxu0 %v2736_v35  ;;  %v2938_v35 = vld [vmem:[%s4322_s22 + $0xd8] sm:$0xff] }
 0xb60   : > { %3965 = vmatprep.subr.mxu0 %v2735_v58  ;;  %2959 = vmatprep.subr.mxu1 %v2938_v35  ;;  %v3062_v35 = vld [vmem:[%s4333_s15 + $0x50] sm:$0xff] }
 0xb61   : > { %3966 = vmatpush3.msra.mxu0 %v2735_v58  ;;  %v2937_v58 = vld [vmem:[%s4322_s22 + $0xd0] sm:$0xff] }
 0xb62   : > { %2960 = vmatpush1.msra.mxu1 %v2937_v58  ;;  %v3077_v58 = vld [vmem:[%s4333_s15 + $0xc8] sm:$0xff] }
 0xc01   : > { %v3927_v59 = vpop.f32.mrf.mxu0 }
 0xc03   : > { %v2577_v60 = vpop.f32.mrf.mxu0 }
 0xc04   : > { %v4039_v61 = vpack.i.bf16 %v3927_v59, %v2577_v60 }
 0xc06   : > { %4040 = vrot.lane.b32.xlu0 %v4039_v61, %s4189_s13 }
 0xc0a   : > { %4050 = vrot.lane.b32.xlu0 %v4049_v34, %s4190_s24  ;;  %v2726_v34 = vsel %vm2725_vm2, %v2721_v55, %v4037_v4  ;;  %v2934_v55 = vld [vmem:[%s4322_s22 + $0xb8] sm:$0xff] }
 0xc0b   : > { %v3934_v62 = vpop.f32.mrf.mxu1 }
 0xc0d   : > { %v2664_v63 = vpop.f32.mrf.mxu1 }
 0xc0e   : > { %v4054_v0 = vpack.i.bf16 %v3934_v62, %v2664_v63 }
 0xc10   : > { %4055 = vrot.lane.b32.xlu1 %v4054_v0, %s4189_s13 }
 0xc78   : > { %v4041_v1 = vpop.permute.xlu0 %4040 }
 0xc79   : > { %v4043_v6 = vunpack.i.h.bf16 %v4041_v1  ;;  %v4042_v54 = vunpack.i.l.bf16 %v4041_v1  ;;  %v2936_v1 = vld [vmem:[%s4322_s22 + $0xc8] sm:$0xff] }
 0xc7a   : > { %2961 = vmatprep.subr.mxu1 %v2936_v1  ;;  %v3072_v1 = vld [vmem:[%s4333_s15 + $0xa0] sm:$0xff] }
 0xc7b   : > { %v2731_v11 = vsel %vm2730_vm3, %v2726_v34, %v4042_v54  ;;  %v2732_v13 = vsel %vm2730_vm3, %v2727_v15, %v4043_v6  ;;  %v2935_v54 = vld [vmem:[%s4322_s22 + $0xc0] sm:$0xff]  ;;  %v2933_v15 = vld [vmem:[%s4322_s22 + $0xb0] sm:$0xff] }
 0xc7c   : > { %3967 = vmatprep.mubr.f32.mxu0 %v2731_v11  ;;  %v4051_v7 = vpop.permute.xlu0 %4050  ;;  %2962 = vmatpush1.msra.mxu1 %v2935_v54  ;;  %v2932_v11 = vld [vmem:[%s4322_s22 + $0xa8] sm:$0xff] }
 0xc7d   : > { %3968 = vmatmul.mubr.f32.vlgmr.msra.gmra.mxu0 %v2732_v13  ;;  %v4053_v9 = vunpack.i.h.bf16 %v4051_v7  ;;  %v4052_v19 = vunpack.i.l.bf16 %v4051_v7  ;;  %2963 = vmatprep.subr.mxu1 %v2934_v55  ;;  %v2930_v7 = vld [vmem:[%s4322_s22 + $0x98] sm:$0xff] }
 0xc7e   : > { %2964 = vmatpush1.msra.mxu1 %v2933_v15 }
 0xc7f   : > { %v2728_v17 = vsel %vm2725_vm2, %v2723_v16, %v4052_v19  ;;  %v2729_v26 = vsel %vm2725_vm2, %v2724_v21, %v4053_v9  ;;  %2965 = vmatprep.subr.mxu1 %v2932_v11  ;;  %v2927_v9 = vld [vmem:[%s4322_s22 + $0x80] sm:$0xff]  ;;  %v2926_v19 = vld [vmem:[%s4322_s22 + $0x78] sm:$0xff]  ;;  %v2921_v21 = vld [vmem:[%s4322_s22 + $0x50] sm:$0xff] }
 0xc80   : > { %2966 = vmatpush1.msra.mxu1 %v2931_v20  ;;  %v2922_v16 = vld [vmem:[%s4322_s22 + $0x58] sm:$0xff] }
 0xc81   : > { %2967 = vmatprep.subr.mxu1 %v2930_v7 }
 0xc82   : > { %v4056_v12 = vpop.permute.xlu1 %4055  ;;  %2968 = vmatpush1.msra.mxu1 %v2929_v22 }
 0xc83   : > { %v4058_v23 = vunpack.i.h.bf16 %v4056_v12  ;;  %v4057_v38 = vunpack.i.l.bf16 %v4056_v12  ;;  %2969 = vmatprep.subr.mxu1 %v2928_v32  ;;  %v2925_v12 = vld [vmem:[%s4322_s22 + $0x70] sm:$0xff] }
 0xc84   : > { %2970 = vmatpush1.msra.mxu1 %v2927_v9 }
 0xc85   : > { %v2733_v48 = vsel %vm2730_vm3, %v2728_v17, %v4057_v38  ;;  %v2734_v49 = vsel %vm2730_vm3, %v2729_v26, %v4058_v23  ;;  %2971 = vmatprep.subr.mxu1 %v2926_v19  ;;  %v2924_v23 = vld [vmem:[%s4322_s22 + $0x68] sm:$0xff]  ;;  %v2923_v38 = vld [vmem:[%s4322_s22 + $0x60] sm:$0xff] }
 0xc86   : > { %3970 = vmatprep.mubr.f32.mxu0 %v2733_v48  ;;  %2972 = vmatpush1.msra.mxu1 %v2925_v12  ;;  %v2920_v17 = vld [vmem:[%s4322_s22 + $0x48] sm:$0xff]  ;;  %v2919_v26 = vld [vmem:[%s4322_s22 + $0x40] sm:$0xff]  ;;  %v2918_v48 = vld [vmem:[%s4322_s22 + $0x38] sm:$0xff] }
 0xc87   : > { %3971 = vmatmul.mubr.f32.gmra.mxu0 %v2734_v49  ;;  %2973 = vmatprep.subr.mxu1 %v2924_v23  ;;  %v2917_v49 = vld [vmem:[%s4322_s22 + $0x30] sm:$0xff]  ;;  %v2905_v23 = vsub.s32 3, %v4430_v33 }
 0xc88   : > { %2974 = vmatpush1.msra.mxu1 %v2923_v38 }
 0xc89   : > { %2975 = vmatprep.subr.mxu1 %v2922_v16  ;;  %v4143_v16 = vld [vmem:[%s4295_s25] sm:$0xf] }
 0xc8a   : > { %2976 = vmatpush1.msra.mxu1 %v2921_v21  ;;  %v2898_v21 = vrot.slane %v4143_v16, %v900_v8 }
 0xc8b   : > { %2977 = vmatprep.subr.mxu1 %v2920_v17 }
 0xc8c   : > { %2978 = vmatpush1.msra.mxu1 %v2919_v26 }
 0xc8d   : > { %2979 = vmatprep.subr.mxu1 %v2918_v48 }
 0xc8e   : > { %2980 = vmatpush1.msra.mxu1 %v2917_v49  ;;  %v2906_v49 = vrot.slane %v4143_v16, %v2905_v23 }
 0xd3d   : > { %v3969_v50 = vpop.f32.mrf.mxu0 }
 0xd3e   : > { %v2837_v29 = vadd.f32 %v4139_v44, %v3969_v50  ;;  %v2916_v50 = vld [vmem:[%s4322_s22 + $0x28] sm:$0xff]  ;;  %v2914_v44 = vld [vmem:[%s4322_s22 + $0x18] sm:$0xff] }
 0xd3f   : > { %v2817_v30 = vpop.f32.mrf.mxu0  ;;  %2981 = vmatprep.subr.mxu1 %v2916_v50 }
 0xd40   : > { %v4781_v43 = vadd.f32 %v3627_v28, %v2837_v29  ;;  %v2836_v3 = vadd.f32 %v4140_v31, %v2817_v30  ;;  %v2913_v29 = vld [vmem:[%s4322_s22 + $0x10] sm:$0xff]  ;;  %v2912_v30 = vld [vmem:[%s4322_s22 + $0x8] sm:$0xff]  ;;  %v2911_v31 = vld [vmem:[%s4322_s22] sm:$0xff] }
 0xd42   : > { %v4783_v14 = vadd.f32 %v3627_v28, %v2836_v3  ;;  %2853 = vadd.xlane.f32.xlu1 %v4781_v43  ;;  %v3083_v3 = vld [vmem:[%s4333_s15 + $0xf8] sm:$0xff] }
 0xd43   : > { %3741 = vmatprep.subr.mxu0 %v3083_v3 }
 0xd44   : > { %2851 = vadd.xlane.f32.xlu0 %v4783_v14 }
 0xd47   : > { %v3972_v24 = vpop.f32.mrf.mxu0 }
 0xd48   : > { %v2839_v52 = vadd.f32 %v4142_v51, %v3972_v24  ;;  %v3067_v24 = vld [vmem:[%s4333_s15 + $0x78] sm:$0xff]  ;;  %v3065_v51 = vld [vmem:[%s4333_s15 + $0x68] sm:$0xff] }
 0xd49   : > { %v2827_v45 = vpop.f32.mrf.mxu0  ;;  %3742 = vmatpush3.msra.mxu0 %v3067_v24  ;;  %v3071_v24 = vld [vmem:[%s4333_s15 + $0x98] sm:$0xff] }
 0xd4a   : > { %v2838_v47 = vadd.f32 %v4141_v46, %v2827_v45  ;;  %v4790_v56 = vadd.f32 %v3627_v28, %v2839_v52  ;;  %v3082_v45 = vld [vmem:[%s4333_s15 + $0xf0] sm:$0xff]  ;;  %v3080_v52 = vld [vmem:[%s4333_s15 + $0xe0] sm:$0xff] }
 0xd4b   : > { %v3066_v46 = vld [vmem:[%s4333_s15 + $0x70] sm:$0xff]  ;;  %3743 = vmatprep.subr.mxu0 %v3082_v45 }
 0xd4c   : > { %v4787_v53 = vadd.f32 %v3627_v28, %v2838_v47  ;;  %v2915_v28 = vld [vmem:[%s4322_s22 + $0x20] sm:$0xff]  ;;  %v3081_v47 = vld [vmem:[%s4333_s15 + $0xe8] sm:$0xff]  ;;  %3744 = vmatpush3.msra.mxu0 %v3066_v46  ;;  %v3070_v45 = vld [vmem:[%s4333_s15 + $0x90] sm:$0xff] }
 0xd4d   : > { %2982 = vmatpush1.msra.mxu1 %v2915_v28  ;;  %3745 = vmatprep.subr.mxu0 %v3081_v47  ;;  %v3054_v46 = vld [vmem:[%s4333_s15 + $0x10] sm:$0xff]  ;;  %v3069_v47 = vld [vmem:[%s4333_s15 + $0x88] sm:$0xff] }
 0xd4e   : > { %2855 = vadd.xlane.f32.xlu0 %v4787_v53  ;;  %2983 = vmatprep.subr.mxu1 %v2914_v44 }
 0xd4f   : > { %2984 = vmatpush1.msra.mxu1 %v2913_v29  ;;  %3746 = vmatpush3.msra.mxu0 %v3065_v51  ;;  %v3068_v51 = vld [vmem:[%s4333_s15 + $0x80] sm:$0xff] }
 0xd50   : > { %2985 = vmatprep.subr.mxu1 %v2912_v30  ;;  %3747 = vmatprep.subr.mxu0 %v3080_v52  ;;  %v3052_v52 = vld [vmem:[%s4333_s15] sm:$0xff] }
 0xd51   : > { %2986 = vmatpush1.msra.mxu1 %v2911_v31  ;;  %3748 = vmatpush3.msra.mxu0 %v3064_v57 }
 0xd52   : > { %2857 = vadd.xlane.f32.xlu0 %v4790_v56  ;;  %3749 = vmatprep.subr.mxu0 %v3079_v25 }
 0xd53   : > { %3750 = vmatpush3.msra.mxu0 %v3063_v41 }
 0xd54   : > { %3751 = vmatprep.subr.mxu0 %v3078_v27 }
 0xd55   : > { %3752 = vmatpush3.msra.mxu0 %v3062_v35 }
 0xd56   : > { %3753 = vmatprep.subr.mxu0 %v3077_v58 }
 0xdcb   : > { %v2854_v59 = vpop.xlane.xlu1 %2853 }
 0xdcc   : > { %v2860_v60 = vmul.f32 0.0078125, %v2854_v59  ;;  %v3061_v59 = vld [vmem:[%s4333_s15 + $0x48] sm:$0xff] }
 0xdcd   : > { %v2852_v61 = vpop.xlane.xlu0 %2851  ;;  %3754 = vmatpush3.msra.mxu0 %v3061_v59 }
 0xdce   : > { %v4800_v62 = vsub.f32 %v4781_v43, %v2860_v60  ;;  %v2859_v63 = vmul.f32 0.0078125, %v2852_v61  ;;  %v3076_v60 = vld [vmem:[%s4333_s15 + $0xc0] sm:$0xff] }
 0xdcf   : > { %v3060_v61 = vld [vmem:[%s4333_s15 + $0x40] sm:$0xff]  ;;  %3755 = vmatprep.subr.mxu0 %v3076_v60 }
 0xdd0   : > { %v4803_v0 = vsub.f32 %v4783_v14, %v2859_v63  ;;  %v2868_v42 = vmul.f32 %v4800_v62, %v4800_v62  ;;  %v3075_v63 = vld [vmem:[%s4333_s15 + $0xb8] sm:$0xff]  ;;  %3756 = vmatpush3.msra.mxu0 %v3060_v61 }
 0xdd1   : > { %3757 = vmatprep.subr.mxu0 %v3075_v63 }
 0xdd2   : > { %2873 = vadd.xlane.f32.xlu1 %v2868_v42  ;;  %v2867_v40 = vmul.f32 %v4803_v0, %v4803_v0  ;;  %v3059_v42 = vld [vmem:[%s4333_s15 + $0x38] sm:$0xff] }
 0xdd3   : > { %3758 = vmatpush3.msra.mxu0 %v3059_v42 }
 0xdd4   : > { %2871 = vadd.xlane.f32.xlu0 %v2867_v40  ;;  %v3074_v40 = vld [vmem:[%s4333_s15 + $0xb0] sm:$0xff] }
 0xdd5   : > { %3759 = vmatprep.subr.mxu0 %v3074_v40 }
 0xdd7   : > { %v2856_v36 = vpop.xlane.xlu0 %2855 }
 0xdd8   : > { %v2861_v10 = vmul.f32 0.0078125, %v2856_v36  ;;  %v3058_v36 = vld [vmem:[%s4333_s15 + $0x30] sm:$0xff] }
 0xdd9   : > { %3760 = vmatpush3.msra.mxu0 %v3058_v36 }
 0xdda   : > { %v4810_v2 = vsub.f32 %v4787_v53, %v2861_v10  ;;  %v3073_v10 = vld [vmem:[%s4333_s15 + $0xa8] sm:$0xff] }
 0xddb   : > { %v2858_v4 = vpop.xlane.xlu0 %2857  ;;  %3761 = vmatprep.subr.mxu0 %v3073_v10 }
 0xddc   : > { %v2862_v5 = vmul.f32 0.0078125, %v2858_v4  ;;  %v2869_v6 = vmul.f32 %v4810_v2, %v4810_v2  ;;  %v3057_v4 = vld [vmem:[%s4333_s15 + $0x28] sm:$0xff] }
 0xddd   : > { %3762 = vmatpush3.msra.mxu0 %v3057_v4 }
 0xdde   : > { %v4818_v34 = vsub.f32 %v4790_v56, %v2862_v5  ;;  %2875 = vadd.xlane.f32.xlu0 %v2869_v6  ;;  %v3056_v5 = vld [vmem:[%s4333_s15 + $0x20] sm:$0xff]  ;;  %3763 = vmatprep.subr.mxu0 %v3072_v1 }
 0xddf   : > { %3764 = vmatpush3.msra.mxu0 %v3056_v5 }
 0xde0   : > { %v2870_v13 = vmul.f32 %v4818_v34, %v4818_v34  ;;  %3765 = vmatprep.subr.mxu0 %v3071_v24 }
 0xde2   : > { %2877 = vadd.xlane.f32.xlu1 %v2870_v13 }
 0xe5b   : > { %v2874_v6 = vpop.xlane.xlu1 %2873 }
 0xe5c   : > { %v2880_v54 = vmul.f32 0.0078125, %v2874_v6 }
 0xe5d   : > { %v2872_v55 = vpop.xlane.xlu0 %2871 }
 0xe5e   : > { %v2884_v15 = vadd.f32 1e-06, %v2880_v54  ;;  %v2879_v11 = vmul.f32 0.0078125, %v2872_v55 }
 0xe60   : > { %4131 = vrsqrt.f32 %v2884_v15  ;;  %v2883_v13 = vadd.f32 1e-06, %v2879_v11 }
 0xe62   : > { %4133 = vrsqrt.f32 %v2883_v13 }
 0xe67   : > { %v2876_v20 = vpop.xlane.xlu0 %2875 }
 0xe68   : > { %v2881_v7 = vmul.f32 0.0078125, %v2876_v20 }
 0xe6a   : > { %v2885_v22 = vadd.f32 1e-06, %v2881_v7 }
 0xe6b   : > { %v2878_v32 = vpop.xlane.xlu1 %2877 }
 0xe6c   : > { %4135 = vrsqrt.f32 %v2885_v22  ;;  %v2882_v9 = vmul.f32 0.0078125, %v2878_v32 }
 0xe6d   : > { %v4132_v19 = vpop.eup %4131 }
 0xe6e   : > { %v2886_v12 = vadd.f32 1e-06, %v2882_v9  ;;  %v2892_v26 = vmul.f32 %v4132_v19, %v4800_v62  ;;  %v3628_v9 = vld [vmem:[%s743_s21] ss:$0 sm:$0xff] }
 0xe6f   : > { %v4134_v38 = vpop.eup %4133 }
 0xe70   : > { %4137 = vrsqrt.f32 %v2886_v12  ;;  %v2891_v17 = vmul.f32 %v4134_v38, %v4803_v0  ;;  %v2900_v28 = vmul.f32 %v2898_v21, %v2892_v26 }
 0xe72   : > { %v2899_v48 = vmul.f32 %v2898_v21, %v2891_v17  ;;  %v2908_v44 = vadd.f32 %v2906_v49, %v2900_v28 }
 0xe74   : > { %v2907_v50 = vadd.f32 %v2906_v49, %v2899_v48 }
 0xe76   : > { %3020 = vmatmul.mubr.f32.vlgmr.msra.gmra.mxu1 %v2907_v50 }
 0xe77   : > { %3025 = vmatprep.mubr.f32.mxu1 %v4188_v18 }
 0xe79   : > { %v4136_v29 = vpop.eup %4135 }
 0xe7a   : > { %3026 = vmatmul.mubr.f32.gmra.mxu1 %v2908_v44  ;;  %v2893_v33 = vmul.f32 %v4136_v29, %v4810_v2  ;;  %v3055_v2 = vld [vmem:[%s4333_s15 + $0x18] sm:$0xff] }
 0xe7b   : > { %3031 = vmatprep.mubr.f32.mxu1 %v4188_v18  ;;  %3766 = vmatpush3.msra.mxu0 %v3055_v2 }
 0xe7c   : > { %v2901_v8 = vmul.f32 %v2898_v21, %v2893_v33  ;;  %3767 = vmatprep.subr.mxu0 %v3070_v45 }
 0xe7d   : > { %v4138_v62 = vpop.eup %4137  ;;  %3768 = vmatpush3.msra.mxu0 %v3054_v46 }
 0xe7e   : > { %v2909_v0 = vadd.f32 %v2906_v49, %v2901_v8  ;;  %v2894_v30 = vmul.f32 %v4138_v62, %v4818_v34  ;;  %3769 = vmatprep.subr.mxu0 %v3069_v47  ;;  %v3053_v34 = vld [vmem:[%s4333_s15 + $0x8] sm:$0xff] }
 0xe7f   : > { %3770 = vmatpush3.msra.mxu0 %v3053_v34 }
 0xe80   : > { %3032 = vmatmul.mubr.f32.gmra.mxu1 %v2909_v0  ;;  %v2902_v31 = vmul.f32 %v2898_v21, %v2894_v30  ;;  %3771 = vmatprep.subr.mxu0 %v3068_v51 }
 0xe81   : > { %3037 = vmatprep.mubr.f32.mxu1 %v4188_v18  ;;  %3772 = vmatpush3.msra.mxu0 %v3052_v52  ;;  %v2943_v18 = vld [vmem:[%s4328_s26] sm:$0x3] }
 0xe82   : > { %v2910_v3 = vadd.f32 %v2906_v49, %v2902_v31  ;;  %v2948_v57 = vrot.slane %v2943_v18, %v4433_v37  ;;  %v2952_v25 = vrot.slane %v2943_v18, %v4437_v39 }
 0xe84   : > { %3038 = vmatmul.mubr.f32.gmra.mxu1 %v2910_v3 }
 0xf36   : > { %v3021_v41 = vpop.f32.mrf.mxu1 }
 0xf37   : > { %v3022_v27 = vadd.f32 %v3021_v41, %v2948_v57 }
 0xf38   : > { %v3023_v35 = vpop.f32.mrf.mxu1 }
 0xf39   : > { %v3024_v58 = vadd.f32 %v3023_v35, %v2952_v25  ;;  %v3044_v61 = vmax.f32 %v3022_v27, 0.0 }
 0xf3a   : > { %v3027_v59 = vpop.f32.mrf.mxu1 }
 0xf3b   : > { %v3045_v60 = vmax.f32 %v3024_v58, 0.0  ;;  %v3028_v63 = vadd.f32 %v3027_v59, %v2948_v57 }
 0xf3c   : > { %v3029_v42 = vpop.f32.mrf.mxu1 }
 0xf3d   : > { %v3030_v40 = vadd.f32 %v3029_v42, %v2952_v25  ;;  %3148 = vmatprep.mubr.f32.mxu0 %v3045_v60  ;;  %v3046_v10 = vmax.f32 %v3028_v63, 0.0 }
 0xf3e   : > { %3149 = vmatmul.mubr.f32.vlgmr.msra.gmra.mxu0 %v3044_v61 }
 0xf3f   : > { %v3047_v36 = vmax.f32 %v3030_v40, 0.0 }
 0xf40   : > { %v3033_v4 = vpop.f32.mrf.mxu1 }
 0xf41   : > { %3153 = vmatprep.mubr.f32.mxu0 %v3047_v36  ;;  %v3034_v1 = vadd.f32 %v3033_v4, %v2948_v57 }
 0xf42   : > { %v3035_v37 = vpop.f32.mrf.mxu1  ;;  %3154 = vmatmul.mubr.f32.gmra.mxu0 %v3046_v10 }
 0xf43   : > { %v3036_v39 = vadd.f32 %v3035_v37, %v2952_v25  ;;  %v3048_v54 = vmax.f32 %v3034_v1, 0.0 }
 0xf44   : > { %v3039_v5 = vpop.f32.mrf.mxu1 }
 0xf45   : > { %v3049_v6 = vmax.f32 %v3036_v39, 0.0  ;;  %v3040_v55 = vadd.f32 %v3039_v5, %v2948_v57 }
 0xf46   : > { %v3041_v15 = vpop.f32.mrf.mxu1 }
 0xf47   : > { %v3042_v11 = vadd.f32 %v3041_v15, %v2952_v25  ;;  %3158 = vmatprep.mubr.f32.mxu0 %v3049_v6  ;;  %v3050_v20 = vmax.f32 %v3040_v55, 0.0 }
 0xf48   : > { %3159 = vmatmul.mubr.f32.gmra.mxu0 %v3048_v54 }
 0xf49   : > { %v3051_v13 = vmax.f32 %v3042_v11, 0.0 }
 0xf4b   : > { %3163 = vmatprep.mubr.f32.mxu0 %v3051_v13 }
 0xf4c   : > { %3164 = vmatmul.mubr.f32.gmra.mxu0 %v3050_v20 }
 0xffe   : > { %v3773_v7 = vpop.f32.mrf.mxu0 }
0x1000   : > { %v3774_v22 = vpop.f32.mrf.mxu0 }
0x1001   : > { %v3775_v32 = vadd.f32 %v3774_v22, %v3773_v7 }
0x1002   : > { %v3776_v19 = vpop.f32.mrf.mxu0 }
0x1003   : > { %v3169_v12 = vadd.f32 %v3775_v32, %v4783_v14 }
0x1004   : > { %v3777_v23 = vpop.f32.mrf.mxu0 }
0x1005   : > { %v3180_v38 = vadd.f32 %v3628_v9, %v3169_v12  ;;  %v3778_v16 = vadd.f32 %v3777_v23, %v3776_v19 }
0x1007   : > { %3184 = vst [vmem:[#allocation2 + $0x10] sm:$0xff] %v3180_v38  ;;  %v3170_v21 = vadd.f32 %v3778_v16, %v4781_v43 }
0x1008   : > { %v3779_v17 = vpop.f32.mrf.mxu0 }
0x1009   : > { %v3181_v26 = vadd.f32 %v3628_v9, %v3170_v21 }
0x100a   : > { %v3780_v48 = vpop.f32.mrf.mxu0 }
0x100b   : > { %3185 = vst [vmem:[#allocation2] sm:$0xff] %v3181_v26  ;;  %v3781_v49 = vadd.f32 %v3780_v48, %v3779_v17 }
0x100c   : > { %v3782_v50 = vpop.f32.mrf.mxu0 }
0x100d   : > { %v3171_v28 = vadd.f32 %v3781_v49, %v4787_v53 }
0x100e   : > { %v3783_v44 = vpop.f32.mrf.mxu0 }
0x100f   : > { %v3182_v29 = vadd.f32 %v3628_v9, %v3171_v28  ;;  %v3784_v33 = vadd.f32 %v3783_v44, %v3782_v50 }
0x1011   : > { %3186 = vst [vmem:[#allocation2 + $0x18] sm:$0xff] %v3182_v29  ;;  %v3172_v14 = vadd.f32 %v3784_v33, %v4790_v56 }
0x1013   : > { %v3183_v8 = vadd.f32 %v3628_v9, %v3172_v14 }
0x1015   : > { %3187 = vst [vmem:[#allocation2 + $0x8] sm:$0xff] %v3183_v8 }
0x1016 PF: > { %p3629_p6 = scmp.ne.s32.totalorder %s4282_s19, 2 }
0x1017   : > { %s5066_s15 = sld [smem:[#allocation10_spill]] (!%p3629_p6) }
0x1018   : > { %3191 = sbr.rel (%p3629_p6) target bundleno = 4638 (0x121e), region = 92  ;;  %s5067_s30 = sld [smem:[#allocation9_spill]] (!%p3629_p6) }
0x1019   : > { %s5068_s24 = sld [smem:[#allocation11_spill]] (!%p3629_p6) }
0x101d   : > { %v3193_v43 = vld [vmem:[#allocation2 + $0x10] sm:$0xff]  ;;  %v3194_v62 = vld [vmem:[#allocation2] sm:$0xff]  ;;  %v3195_v0 = vld [vmem:[#allocation2 + $0x18] sm:$0xff]  ;;  %v4192_v21 = vmov 0.0   ;;  %v3242_v29 = vlaneseq }
0x101e   : > { %3197 = vadd.xlane.f32.xlu0 %v3193_v43  ;;  %3199 = vadd.xlane.f32.xlu1 %v3194_v62  ;;  %v3196_v30 = vld [vmem:[#allocation2 + $0x8] sm:$0xff]  ;;  %v3289_v53 = vld [vmem:[%s5066_s15 + $0xf8] sm:$0xff]  ;;  %v3288_v56 = vld [vmem:[%s5066_s15 + $0xf0] sm:$0xff] }
0x101f   : > { %v3287_v31 = vld [vmem:[%s5066_s15 + $0xe8] sm:$0xff]  ;;  %3302 = vmatprep.subr.mxu0 %v3289_v53  ;;  %v3286_v3 = vld [vmem:[%s5066_s15 + $0xe0] sm:$0xff]  ;;  %3973 = vmatprep.subr.mxu1 %v3289_v53  ;;  %v3285_v24 = vld [vmem:[%s5066_s15 + $0xd8] sm:$0xff] }
0x1020   : > { %3303 = vmatpush1.msra.mxu0 %v3288_v56  ;;  %3989 = vmatpush1.msra.mxu1 %v3288_v56  ;;  %v3284_v2 = vld [vmem:[%s5066_s15 + $0xd0] sm:$0xff]  ;;  %v3283_v45 = vld [vmem:[%s5066_s15 + $0xc8] sm:$0xff]  ;;  %v3282_v46 = vld [vmem:[%s5066_s15 + $0xc0] sm:$0xff] }
0x1021   : > { %3304 = vmatprep.subr.mxu0 %v3287_v31  ;;  %3974 = vmatprep.subr.mxu1 %v3287_v31  ;;  %v3281_v40 = vld [vmem:[%s5066_s15 + $0xb8] sm:$0xff]  ;;  %v3280_v36 = vld [vmem:[%s5066_s15 + $0xb0] sm:$0xff]  ;;  %v3279_v10 = vld [vmem:[%s5066_s15 + $0xa8] sm:$0xff] }
0x1022   : > { %3201 = vadd.xlane.f32.xlu0 %v3195_v0  ;;  %3203 = vadd.xlane.f32.xlu1 %v3196_v30  ;;  %v3278_v4 = vld [vmem:[%s5066_s15 + $0xa0] sm:$0xff]  ;;  %v3277_v1 = vld [vmem:[%s5066_s15 + $0x98] sm:$0xff]  ;;  %v3276_v37 = vld [vmem:[%s5066_s15 + $0x90] sm:$0xff] }
0x1023   : > { %3305 = vmatpush1.msra.mxu0 %v3286_v3  ;;  %3990 = vmatpush1.msra.mxu1 %v3286_v3  ;;  %v3275_v39 = vld [vmem:[%s5066_s15 + $0x88] sm:$0xff]  ;;  %v3274_v5 = vld [vmem:[%s5066_s15 + $0x80] sm:$0xff]  ;;  %v3273_v6 = vld [vmem:[%s5066_s15 + $0x78] sm:$0xff] }
0x1024   : > { %3306 = vmatprep.subr.mxu0 %v3285_v24  ;;  %3975 = vmatprep.subr.mxu1 %v3285_v24  ;;  %v3272_v54 = vld [vmem:[%s5066_s15 + $0x70] sm:$0xff]  ;;  %v3271_v55 = vld [vmem:[%s5066_s15 + $0x68] sm:$0xff]  ;;  %v3270_v15 = vld [vmem:[%s5066_s15 + $0x60] sm:$0xff] }
0x1025   : > { %3307 = vmatpush1.msra.mxu0 %v3284_v2  ;;  %3991 = vmatpush1.msra.mxu1 %v3284_v2  ;;  %v3269_v11 = vld [vmem:[%s5066_s15 + $0x58] sm:$0xff]  ;;  %v3268_v13 = vld [vmem:[%s5066_s15 + $0x50] sm:$0xff]  ;;  %v3267_v20 = vld [vmem:[%s5066_s15 + $0x48] sm:$0xff] }
0x1026   : > { %3308 = vmatprep.subr.mxu0 %v3283_v45  ;;  %3976 = vmatprep.subr.mxu1 %v3283_v45  ;;  %v3266_v7 = vld [vmem:[%s5066_s15 + $0x40] sm:$0xff]  ;;  %v3265_v22 = vld [vmem:[%s5066_s15 + $0x38] sm:$0xff]  ;;  %v3264_v32 = vld [vmem:[%s5066_s15 + $0x30] sm:$0xff] }
0x1027   : > { %3309 = vmatpush1.msra.mxu0 %v3282_v46  ;;  %3992 = vmatpush1.msra.mxu1 %v3282_v46  ;;  %v3263_v9 = vld [vmem:[%s5066_s15 + $0x28] sm:$0xff]  ;;  %v3262_v19 = vld [vmem:[%s5066_s15 + $0x20] sm:$0xff]  ;;  %v3261_v12 = vld [vmem:[%s5066_s15 + $0x18] sm:$0xff] }
0x1028   : > { %3310 = vmatprep.subr.mxu0 %v3281_v40  ;;  %3977 = vmatprep.subr.mxu1 %v3281_v40  ;;  %v3260_v23 = vld [vmem:[%s5066_s15 + $0x10] sm:$0xff]  ;;  %v3259_v38 = vld [vmem:[%s5066_s15 + $0x8] sm:$0xff]  ;;  %v3258_v16 = vld [vmem:[%s5066_s15] sm:$0xff] }
0x1029   : > { %3311 = vmatpush1.msra.mxu0 %v3280_v36  ;;  %3993 = vmatpush1.msra.mxu1 %v3280_v36  ;;  %v3192_v53 = vld [vmem:[%s5067_s30] sm:$0x3] }
0x102a   : > { %3312 = vmatprep.subr.mxu0 %v3279_v10  ;;  %3978 = vmatprep.subr.mxu1 %v3279_v10 }
0x102b   : > { %3313 = vmatpush1.msra.mxu0 %v3278_v4  ;;  %3994 = vmatpush1.msra.mxu1 %v3278_v4 }
0x102c   : > { %3314 = vmatprep.subr.mxu0 %v3277_v1  ;;  %3979 = vmatprep.subr.mxu1 %v3277_v1 }
0x102d   : > { %3315 = vmatpush1.msra.mxu0 %v3276_v37  ;;  %3995 = vmatpush1.msra.mxu1 %v3276_v37 }
0x102e   : > { %3316 = vmatprep.subr.mxu0 %v3275_v39  ;;  %3980 = vmatprep.subr.mxu1 %v3275_v39 }
0x102f   : > { %3317 = vmatpush1.msra.mxu0 %v3274_v5  ;;  %3996 = vmatpush1.msra.mxu1 %v3274_v5 }
0x1030   : > { %3318 = vmatprep.subr.mxu0 %v3273_v6  ;;  %3981 = vmatprep.subr.mxu1 %v3273_v6 }
0x1031   : > { %3319 = vmatpush1.msra.mxu0 %v3272_v54  ;;  %3997 = vmatpush1.msra.mxu1 %v3272_v54 }
0x1032   : > { %3320 = vmatprep.subr.mxu0 %v3271_v55  ;;  %3982 = vmatprep.subr.mxu1 %v3271_v55 }
0x1033   : > { %3321 = vmatpush1.msra.mxu0 %v3270_v15  ;;  %3998 = vmatpush1.msra.mxu1 %v3270_v15 }
0x1034   : > { %3322 = vmatprep.subr.mxu0 %v3269_v11  ;;  %3983 = vmatprep.subr.mxu1 %v3269_v11 }
0x1035   : > { %3323 = vmatpush1.msra.mxu0 %v3268_v13  ;;  %3999 = vmatpush1.msra.mxu1 %v3268_v13 }
0x1036   : > { %3324 = vmatprep.subr.mxu0 %v3267_v20  ;;  %3984 = vmatprep.subr.mxu1 %v3267_v20 }
0x1037   : > { %3325 = vmatpush1.msra.mxu0 %v3266_v7  ;;  %4000 = vmatpush1.msra.mxu1 %v3266_v7 }
0x1038   : > { %3326 = vmatprep.subr.mxu0 %v3265_v22  ;;  %3985 = vmatprep.subr.mxu1 %v3265_v22 }
0x1039   : > { %3327 = vmatpush1.msra.mxu0 %v3264_v32  ;;  %4001 = vmatpush1.msra.mxu1 %v3264_v32 }
0x103a   : > { %3328 = vmatprep.subr.mxu0 %v3263_v9  ;;  %3986 = vmatprep.subr.mxu1 %v3263_v9 }
0x103b   : > { %3329 = vmatpush1.msra.mxu0 %v3262_v19  ;;  %4002 = vmatpush1.msra.mxu1 %v3262_v19 }
0x103c   : > { %3330 = vmatprep.subr.mxu0 %v3261_v12  ;;  %3366 = vmatprep.mubr.f32.mxu0 %v4192_v21 }
0x103d   : > { %3331 = vmatpush1.msra.mxu0 %v3260_v23  ;;  %3987 = vmatprep.subr.mxu1 %v3261_v12 }
0x103e   : > { %3332 = vmatprep.subr.mxu0 %v3259_v38  ;;  %4003 = vmatpush1.msra.mxu1 %v3260_v23 }
0x103f   : > { %3333 = vmatpush1.msra.mxu0 %v3258_v16  ;;  %3988 = vmatprep.subr.mxu1 %v3259_v38 }
0x1040   : > { %4004 = vmatpush1.msra.mxu1 %v3258_v16  ;;  %3378 = vmatprep.mubr.f32.mxu1 %v4192_v21 }
0x10a7   : > { %v3198_v47 = vpop.xlane.xlu0 %3197  ;;  %v3200_v34 = vpop.xlane.xlu1 %3199 }
0x10a8   : > { %v3206_v51 = vmul.f32 0.0078125, %v3198_v47  ;;  %v3207_v52 = vmul.f32 0.0078125, %v3200_v34 }
0x10aa   : > { %v4925_v18 = vsub.f32 %v3193_v43, %v3206_v51  ;;  %v4927_v57 = vsub.f32 %v3194_v62, %v3207_v52  ;;  %v3243_v62 = vshrl.u32 %v3242_v29, 7 }
0x10ab   : > { %v3202_v25 = vpop.xlane.xlu0 %3201  ;;  %v3204_v41 = vpop.xlane.xlu1 %3203 }
0x10ac   : > { %v3208_v27 = vmul.f32 0.0078125, %v3202_v25  ;;  %v3214_v35 = vmul.f32 %v4925_v18, %v4925_v18  ;;  %v3209_v58 = vmul.f32 0.0078125, %v3204_v41  ;;  %v3215_v61 = vmul.f32 %v4927_v57, %v4927_v57 }
0x10ad   : > { %v3252_v56 = vsub.s32 1, %v3243_v62 }
0x10ae   : > { %v4931_v59 = vsub.f32 %v3195_v0, %v3208_v27  ;;  %3218 = vadd.xlane.f32.xlu0 %v3214_v35  ;;  %v4933_v60 = vsub.f32 %v3196_v30, %v3209_v58  ;;  %v3244_v30 = vsub.s32 0, %v3243_v62 }
0x10af   : > { %v3253_v2 = vrot.slane %v3192_v53, %v3252_v56 }
0x10b0   : > { %v3216_v63 = vmul.f32 %v4931_v59, %v4931_v59  ;;  %v3217_v42 = vmul.f32 %v4933_v60, %v4933_v60  ;;  %v3245_v31 = vrot.slane %v3192_v53, %v3244_v30 }
0x10b2   : > { %3220 = vadd.xlane.f32.xlu0 %v3215_v61  ;;  %3222 = vadd.xlane.f32.xlu1 %v3216_v63 }
0x10b6   : > { %3224 = vadd.xlane.f32.xlu1 %v3217_v42 }
0x1137   : > { %v3219_v17 = vpop.xlane.xlu0 %3218 }
0x1138   : > { %v3226_v26 = vmul.f32 0.0078125, %v3219_v17 }
0x113a   : > { %v3230_v48 = vadd.f32 1e-06, %v3226_v26 }
0x113b   : > { %v3223_v49 = vpop.xlane.xlu1 %3222  ;;  %v3221_v50 = vpop.xlane.xlu0 %3220 }
0x113c   : > { %4144 = vrsqrt.f32 %v3230_v48  ;;  %v3228_v28 = vmul.f32 0.0078125, %v3223_v49  ;;  %v3227_v44 = vmul.f32 0.0078125, %v3221_v50 }
0x113e   : > { %v3232_v33 = vadd.f32 1e-06, %v3228_v28  ;;  %v3231_v14 = vadd.f32 1e-06, %v3227_v44 }
0x113f   : > { %v3225_v8 = vpop.xlane.xlu1 %3224 }
0x1140   : > { %4146 = vrsqrt.f32 %v3232_v33  ;;  %v3229_v43 = vmul.f32 0.0078125, %v3225_v8 }
0x1141   : > { %4148 = vrsqrt.f32 %v3231_v14 }
0x1142   : > { %v3233_v0 = vadd.f32 1e-06, %v3229_v43 }
0x1144   : > { %4150 = vrsqrt.f32 %v3233_v0 }
0x1149   : > { %v4145_v3 = vpop.eup %4144 }
0x114a   : > { %v3238_v24 = vmul.f32 %v4145_v3, %v4925_v18 }
0x114c   : > { %v3246_v45 = vmul.f32 %v3245_v31, %v3238_v24 }
0x114d   : > { %v4147_v46 = vpop.eup %4146 }
0x114e   : > { %v4149_v47 = vpop.eup %4148  ;;  %v3254_v34 = vadd.f32 %v3253_v2, %v3246_v45  ;;  %v3240_v51 = vmul.f32 %v4147_v46, %v4931_v59  ;;  %v3290_v59 = vld [vmem:[%s5068_s24] sm:$0x3] }
0x114f   : > { %v3239_v52 = vmul.f32 %v4149_v47, %v4927_v57  ;;  %v3295_v57 = vrot.slane %v3290_v59, %v3244_v30  ;;  %v3299_v42 = vrot.slane %v3290_v59, %v3252_v56 }
0x1150   : > { %3367 = vmatmul.mubr.f32.vlgmr.msra.gmra.mxu0 %v3254_v34  ;;  %v3248_v25 = vmul.f32 %v3245_v31, %v3240_v51 }
0x1151   : > { %v4151_v41 = vpop.eup %4150  ;;  %3372 = vmatprep.mubr.f32.mxu0 %v4192_v21  ;;  %v3247_v27 = vmul.f32 %v3245_v31, %v3239_v52 }
0x1152   : > { %v3256_v35 = vadd.f32 %v3253_v2, %v3248_v25  ;;  %v3241_v58 = vmul.f32 %v4151_v41, %v4933_v60 }
0x1153   : > { %v3255_v61 = vadd.f32 %v3253_v2, %v3247_v27 }
0x1154   : > { %3379 = vmatmul.mubr.f32.vlgmr.msra.gmra.mxu1 %v3256_v35  ;;  %v3249_v18 = vmul.f32 %v3245_v31, %v3241_v58 }
0x1155   : > { %3373 = vmatmul.mubr.f32.gmra.mxu0 %v3255_v61  ;;  %3384 = vmatprep.mubr.f32.mxu1 %v4192_v21 }
0x1156   : > { %v3257_v63 = vadd.f32 %v3253_v2, %v3249_v18 }
0x1158   : > { %3385 = vmatmul.mubr.f32.gmra.mxu1 %v3257_v63 }
0x1210   : > { %v3368_v40 = vpop.f32.mrf.mxu0 }
0x1211   : > { %v3369_v36 = vadd.f32 %v3368_v40, %v3295_v57 }
0x1212   : > { %v3370_v10 = vpop.f32.mrf.mxu0 }
0x1213   : > { %3391 = vst [vmem:[#allocation3] sm:$0xff] %v3369_v36  ;;  %v3371_v4 = vadd.f32 %v3370_v10, %v3299_v42 }
0x1214   : > { %v3380_v1 = vpop.f32.mrf.mxu1 }
0x1215   : > { %3392 = vst [vmem:[#allocation3 + $0x8] sm:$0xff] %v3371_v4  ;;  %v3374_v60 = vpop.f32.mrf.mxu0  ;;  %v3381_v37 = vadd.f32 %v3380_v1, %v3295_v57 }
0x1216   : > { %v3375_v39 = vadd.f32 %v3374_v60, %v3295_v57  ;;  %v3382_v5 = vpop.f32.mrf.mxu1 }
0x1217   : > { %3395 = vst [vmem:[#allocation3 + $0x20] sm:$0xff] %v3381_v37  ;;  %v3376_v6 = vpop.f32.mrf.mxu0  ;;  %v3383_v54 = vadd.f32 %v3382_v5, %v3299_v42 }
0x1218   : > { %3393 = vst [vmem:[#allocation3 + $0x10] sm:$0xff] %v3375_v39  ;;  %v3377_v55 = vadd.f32 %v3376_v6, %v3299_v42  ;;  %v3386_v15 = vpop.f32.mrf.mxu1 }
0x1219   : > { %3396 = vst [vmem:[#allocation3 + $0x28] sm:$0xff] %v3383_v54  ;;  %v3387_v11 = vadd.f32 %v3386_v15, %v3295_v57 }
0x121a   : > { %3394 = vst [vmem:[#allocation3 + $0x18] sm:$0xff] %v3377_v55  ;;  %v3388_v13 = vpop.f32.mrf.mxu1 }
0x121b   : > { %3397 = vst [vmem:[#allocation3 + $0x30] sm:$0xff] %v3387_v11  ;;  %v3389_v20 = vadd.f32 %v3388_v13, %v3299_v42 }
0x121d   : > { %3398 = vst [vmem:[#allocation3 + $0x38] sm:$0xff] %v3389_v20 }
0x121e PF: > { %p4011_p7 = scmp.eq.s32.totalorder %s4282_s19, 2  ;;  %s4193_s27 = smov [#allocation3]  }
0x121f   : > { %s3405_s12 = sshll.u32 %s4193_s27, 4  ;;  %s3406_s12 = int_to_ptr.vmem [resolvable:$true] %s3405_s12 }
0x1220   : > { %s4152_s4 = scalar_lea.vmem %s3406_s12, 1024  ;;  %p4159_p11 = scmp.lt.s32.totalorder %s3406_s12, %s3406_s12 }
0x1221   : > { %p4153_p8 = scmp.ne.s32.totalorder %s3406_s12, %s4152_s4  ;;  %p4160_p12 = scmp.lt.s32.totalorder %s4152_s4, %s4152_s4 }
0x1223   : > { %p4154_p9 = pnand %p4153_p8, %p4011_p7  ;;  %p4161_p13 = por %p4160_p12, %p4159_p11 }
0x1225   : > { %p4155_p10 = pneg %p4154_p9 }
0x1227   : > { %p4162_p0 = pnand %p4161_p13, %p4155_p10 }
0x1229   : > { %4165 = shalt.err (!%p4162_p0)
}
0x122a   : > { %s4194_s28 = smov 256   ;;  %s4195_s25 = smov 16  }
0x122b   : > { %s5069_s26 = sld [smem:[#allocation12_spill]] }
0x1231   : > { %4008 = dma.vmem_to_hbm [thread:$0]  (%p4011_p7), %s3406_s12, 1024, %s5069_s26, [#allocation4], %s4194_s28, %s4194_s28, %s4195_s25  }
0x1232   : > { %4181 = dma.done.wait (%p4011_p7), [#allocation4], 1024  }
0x1233   : > { %4183 = vsyncadd (%p4011_p7), [#allocation4], 4294966272 }
0x1234 PF: > { %s5070_s21 = sld [smem:[#allocation6_spill]] }
0x123a   : > { %s26_s18 = sadd.s32 1, %s5070_s21  }
0x123b   : > { %p23_p1 = scmp.ge.s32.totalorder %s26_s18, 5  }
0x123d   :  { %25 = sbr.rel (!%p23_p1) target bundleno = 8 (0x8), region = 143 }
0x1242   :  { %3421 = vsyncpa [#allocation4], 1 }
0x1243   :  { %3423 = vsyncpa [#allocation4 + $0x1], 1 }

</bundles_post_ra>
